<compile_context>
chip_gen: v5e
topology: v5e:2x2
jax: 0.10.0
libtpu: 0.0.40
codegen_flags: <defaults>
</compile_context>

<pallas_src>
import functools
import math

import jax
import jax.numpy as jnp
from jax import lax
from jax.experimental import pallas as pl
from jax.experimental.pallas import tpu as pltpu


# ---------------------------------------------------------------------------
# small helpers
# ---------------------------------------------------------------------------

def _ru(n, m):
    return ((n + m - 1) // m) * m


def _vmem_capacity_bytes():
    """Physical per-core VMEM (64 MiB on v7x, 128 MiB on v5e/v6e)."""
    cap = 64 * 1024 * 1024                      # conservative default (v7x)
    try:
        cap = int(getattr(pltpu.get_tpu_info(), "vmem_capacity_bytes", cap))
    except Exception:
        pass
    return cap


_BUFFERED_OK = None


def _buffered_supported():
    """Probe (once, eagerly) whether pipeline_mode=pl.Buffered(1) works."""
    global _BUFFERED_OK
    if _BUFFERED_OK is not None:
        return _BUFFERED_OK
    try:
        def _probe(x_ref, o_ref):
            o_ref[...] = x_ref[...] + 1.0

        x = jnp.zeros((8, 128), jnp.float32)
        out = pl.pallas_call(
            _probe,
            grid=(2,),
            in_specs=[pl.BlockSpec((8, 128), lambda i: (0, 0),
                                   pipeline_mode=pl.Buffered(1))],
            out_specs=pl.BlockSpec((8, 128), lambda i: (i, 0)),
            out_shape=jax.ShapeDtypeStruct((16, 128), jnp.float32),
        )(x)
        out = jax.block_until_ready(out)
        _BUFFERED_OK = bool(jnp.all(out == 1.0))
    except Exception:
        _BUFFERED_OK = False
    return _BUFFERED_OK


def _pick_tile(n, candidates=(512, 256, 128, 64, 32, 16, 8)):
    """Largest candidate row-tile that evenly divides n (else full dim)."""
    for c in candidates:
        if n >= c and n % c == 0:
            return c
    return n           # odd n: single full-dim block (legal, just unpipelined)


def _attn_vmem_bytes(ti, L, c_z, H, dca, ncp, const_bufs):
    """Account for ALL resident buffers + compiler temporaries."""
    f32, bf16 = 4, 2
    hp8 = _ru(H, 8)
    z_blk = 2 * ti * _ru(L, 16) * _ru(c_z, 128) * bf16       # streamed, 2 bufs
    qca_blk = 2 * H * _ru(ti, 8) * _ru(dca, 128) * f32
    kca_res = const_bufs * H * _ru(dca, 8) * _ru(L, 128) * f32
    vvp_res = const_bufs * H * _ru(L, 16) * _ru(ncp, 128) * bf16
    wbb_res = const_bufs * ti * _ru(H, 16) * _ru(c_z, 128) * bf16
    op_out = 2 * ti * hp8 * _ru(c_z, 128) * f32
    ov_out = 2 * H * _ru(ti, 8) * _ru(ncp, 128) * f32
    tmps = 5 * ti * hp8 * _ru(L, 128) * f32                   # logits/softmax
    return (z_blk + qca_blk + kca_res + vvp_res + wbb_res
            + op_out + ov_out + tmps)


def _pick_attn_tile(L, c_z, H, dca, ncp, budget, const_bufs):
    """Largest query-row tile that fits the VMEM budget, with >=2 grid steps."""
    cands = [c for c in (128, 64, 32, 16, 8) if c <= L and L % c == 0]
    for ti in cands:
        if L // ti < 2 and L > 8:
            continue               # keep >=2 steps (v7x: both TensorCores busy)
        if _attn_vmem_bytes(ti, L, c_z, H, dca, ncp, const_bufs) <= budget:
            return ti
    if cands:
        return cands[-1]
    return L                       # no clean divisor: single block


# ---------------------------------------------------------------------------
# Pallas kernels
# ---------------------------------------------------------------------------

def _linear_kernel(x_ref, w_ref, b_ref, o_ref, *, activation):
    y = jnp.dot(x_ref[...], w_ref[...], preferred_element_type=jnp.float32)
    y = y + b_ref[...]
    if activation == "relu":
        y = jnp.maximum(y, 0.0)
    o_ref[...] = y.astype(o_ref.dtype)


def linear_pallas(x, weight, bias=None, activation="none"):
    """y = x @ weight.T + bias (nn.Linear semantics); bf16 MXU, f32 accum."""
    M, K = x.shape
    N = weight.shape[0]
    x16 = x.astype(jnp.bfloat16)
    w16 = jnp.transpose(weight).astype(jnp.bfloat16)               # (K, N)
    b = (jnp.zeros((1, N), jnp.float32) if bias is None
         else bias.reshape(1, N).astype(jnp.float32))
    tm = _pick_tile(M)
    return pl.pallas_call(
        functools.partial(_linear_kernel, activation=activation),
        grid=(M // tm,),
        in_specs=[pl.BlockSpec((tm, K), lambda i: (i, 0)),
                  pl.BlockSpec((K, N), lambda i: (0, 0)),
                  pl.BlockSpec((1, N), lambda i: (0, 0))],
        out_specs=pl.BlockSpec((tm, N), lambda i: (i, 0)),
        out_shape=jax.ShapeDtypeStruct((M, N), jnp.float32),
        compiler_params=pltpu.CompilerParams(
            dimension_semantics=("parallel",)),
    )(x16, w16, b)


def _ipa_attn_kernel(qca_ref, kca_ref, vvp_ref, z_ref, wb_ref,
                     op_ref, ovvp_ref):
    """Fused IPA attention core for one query-row tile.

    qca : (H, TI, Dca) f32   augmented queries
    kca : (H, Dca, L)  f32   augmented keys, L-last (lane-dense, MXU RHS layout)
    vvp : (H, L, Ncp)  bf16  packed [v | vp_global], lane-padded to 128
    z   : (TI, L, c_z) bf16  pair features, natural layout (streamed)
    wb  : (TI, H, c_z) bf16  pair-bias weight (pre-scaled by wl, pre-broadcast)
    out : op (TI, H, c_z) f32 ; ovvp (H, TI, Ncp) f32
    """
    z = z_ref[...]                                             # (TI, L, c_z)

    # pair bias for all heads on the resident z block (batched MXU, batch=TI):
    #   (TI, H, c_z) x (TI, L, c_z)  -contract c_z->  (TI, H, L)
    bias = lax.dot_general(wb_ref[...], z, (((2,), (2,)), ((0,), (0,))),
                           preferred_element_type=jnp.float32)

    # scalar-QK + point-QK + |qp|^2/|kp|^2 for ALL heads in one batched matmul:
    #   (H, TI, Dca) x (H, Dca, L)  -contract Dca, batch H->  (H, TI, L)
    qk = lax.dot_general(qca_ref[...], kca_ref[...],
                         (((2,), (1,)), ((0,), (0,))),
                         preferred_element_type=jnp.float32)

    logits = jnp.transpose(qk, (1, 0, 2)) + bias               # (TI, H, L) f32
    m = jnp.max(logits, axis=-1, keepdims=True)
    p32 = jnp.exp(logits - m)
    r = pl.reciprocal(jnp.sum(p32, axis=-1, keepdims=True), approx=True)
    p = p32.astype(jnp.bfloat16)                               # unnormalised

    # pair-feature aggregation (batch=TI): (TI,H,L) x (TI,L,c_z) -> (TI,H,c_z)
    op_un = lax.dot_general(p, z, (((2,), (1,)), ((0,), (0,))),
                            preferred_element_type=jnp.float32)
    op_ref[...] = op_un * r

    # value / value-point aggregation (batch=H): (H,TI,L)x(H,L,Ncp)->(H,TI,Ncp)
    p_t = jnp.transpose(p, (1, 0, 2))
    ovvp_un = lax.dot_general(p_t, vvp_ref[...], (((2,), (1,)), ((0,), (0,))),
                              preferred_element_type=jnp.float32)
    r_t = jnp.transpose(r[:, :, 0])[:, :, None]                # (H, TI, 1)
    ovvp_ref[...] = ovvp_un * r_t


def ipa_attention_pallas(qca, kca, vvp, z, wb_scaled, *, buffered, budget,
                         limit):
    """Returns op (L,H,c_z) f32 and ovvp (H,L,Ncp) f32 (head-major packed)."""
    H, L, dca = qca.shape
    ncp = vvp.shape[-1]
    c_z = z.shape[-1]
    const_bufs = 1 if buffered else 2
    ti = _pick_attn_tile(L, c_z, H, dca, ncp, budget, const_bufs)

    qca = qca.astype(jnp.float32)
    kca = kca.astype(jnp.float32)
    vvp = vvp.astype(jnp.bfloat16)
    z = z.astype(jnp.bfloat16)       # in a real model produce z in bf16 upstream
    wb_b = jnp.broadcast_to(wb_scaled.astype(jnp.bfloat16)[None], (ti, H, c_z))

    def const_spec(shape):
        idx = lambda i: (0,) * len(shape)
        if buffered:
            return pl.BlockSpec(shape, idx, pipeline_mode=pl.Buffered(1))
        return pl.BlockSpec(shape, idx)

    return pl.pallas_call(
        _ipa_attn_kernel,
        grid=(L // ti,),
        in_specs=[
            pl.BlockSpec((H, ti, dca), lambda i: (0, i, 0)),    # qca (per tile)
            const_spec((H, dca, L)),                            # kca (resident)
            const_spec((H, L, ncp)),                            # vvp (resident)
            pl.BlockSpec((ti, L, c_z), lambda i: (i, 0, 0)),    # z   (streamed)
            const_spec((ti, H, c_z)),                           # wb  (resident)
        ],
        out_specs=(
            pl.BlockSpec((ti, H, c_z), lambda i: (i, 0, 0)),
            pl.BlockSpec((H, ti, ncp), lambda i: (0, i, 0)),
        ),
        out_shape=(
            jax.ShapeDtypeStruct((L, H, c_z), jnp.float32),
            jax.ShapeDtypeStruct((H, L, ncp), jnp.float32),
        ),
        compiler_params=pltpu.CompilerParams(
            dimension_semantics=("parallel",),
            vmem_limit_bytes=limit,
        ),
    )(qca, kca, vvp, z, wb_b)


def _ln(x, g, b, eps):
    mu = jnp.mean(x, axis=-1, keepdims=True)
    xc = x - mu
    var = jnp.mean(xc * xc, axis=-1, keepdims=True)
    return xc * lax.rsqrt(var + eps) * g + b


def _tail_kernel(s_ref, shid_ref, wsw_ref, wsb_ref,
                 g1_ref, b1_ref, w1_ref, c1_ref, w2_ref, c2_ref,
                 w3_ref, c3_ref, g2_ref, b2_ref, o_ref, *, eps):
    s1 = s_ref[...] + jnp.dot(shid_ref[...], wsw_ref[...],
                              preferred_element_type=jnp.float32) + wsb_ref[...]
    s1 = _ln(s1, g1_ref[...], b1_ref[...], eps)
    h = jnp.maximum(jnp.dot(s1, w1_ref[...],
                            preferred_element_type=jnp.float32) + c1_ref[...],
                    0.0)
    h = jnp.maximum(jnp.dot(h, w2_ref[...],
                            preferred_element_type=jnp.float32) + c2_ref[...],
                    0.0)
    h = jnp.dot(h, w3_ref[...], preferred_element_type=jnp.float32) + c3_ref[...]
    o_ref[...] = _ln(s1 + h, g2_ref[...], b2_ref[...], eps)


def ipa_tail_pallas(s0, shid, wsw_t, wsb, g1, b1, w1t, c1, w2t, c2, w3t, c3,
                    g2, b2, eps=1e-5):
    """residual + linear_s + LN + 3-layer ReLU MLP + residual + LN (eval)."""
    L, c_s = s0.shape
    nsh = shid.shape[1]
    tm = _pick_tile(L, candidates=(256, 128, 64, 32, 16, 8))
    shid16 = shid.astype(jnp.bfloat16)          # big (L,nsh) operand in bf16
    wsw16 = wsw_t.astype(jnp.bfloat16)
    row = lambda i: (i, 0)
    full = lambda i: (0, 0)
    in_specs = [
        pl.BlockSpec((tm, c_s), row),
        pl.BlockSpec((tm, nsh), row),
        pl.BlockSpec((nsh, c_s), full),
        pl.BlockSpec((1, c_s), full),
        pl.BlockSpec((1, c_s), full),
        pl.BlockSpec((1, c_s), full),
        pl.BlockSpec((c_s, c_s), full),
        pl.BlockSpec((1, c_s), full),
        pl.BlockSpec((c_s, c_s), full),
        pl.BlockSpec((1, c_s), full),
        pl.BlockSpec((c_s, c_s), full),
        pl.BlockSpec((1, c_s), full),
        pl.BlockSpec((1, c_s), full),
        pl.BlockSpec((1, c_s), full),
    ]
    return pl.pallas_call(
        functools.partial(_tail_kernel, eps=eps),
        grid=(L // tm,),
        in_specs=in_specs,
        out_specs=pl.BlockSpec((tm, c_s), row),
        out_shape=jax.ShapeDtypeStruct((L, c_s), jnp.float32),
        compiler_params=pltpu.CompilerParams(
            dimension_semantics=("parallel",)),
    )(s0, shid16, wsw16, wsb.reshape(1, c_s),
      g1.reshape(1, c_s), b1.reshape(1, c_s),
      w1t, c1.reshape(1, c_s), w2t, c2.reshape(1, c_s),
      w3t, c3.reshape(1, c_s),
      g2.reshape(1, c_s), b2.reshape(1, c_s))


# ---------------------------------------------------------------------------
# Plain-JAX glue (cheap O(L) tensor plumbing: frames, reshapes, transposes)
# ---------------------------------------------------------------------------

def quat2rot(quat):
    """(L, 4) quaternions -> (L, 3, 3) rotation matrices."""
    # TODO(synk): tfold's quat2rot convention assumed to be the standard
    # normalized (w, x, y, z) quaternion -> rotation matrix formula.
    q = quat / jnp.linalg.norm(quat, axis=-1, keepdims=True)
    w, x, y, z = q[:, 0], q[:, 1], q[:, 2], q[:, 3]
    rot = jnp.stack([
        1 - 2 * (y * y + z * z), 2 * (x * y - w * z),     2 * (x * z + w * y),
        2 * (x * y + w * z),     1 - 2 * (x * x + z * z), 2 * (y * z - w * x),
        2 * (x * z - w * y),     2 * (y * z + w * x),     1 - 2 * (x * x + y * y),
    ], axis=-1)
    return rot.reshape(-1, 3, 3)


def apply_trans(pts, rot, trsl, reverse=False):
    """Per-residue rigid transform of grouped points.

    pts: (L, H, P, 3), rot: (L, 3, 3), trsl: (L, 3)."""
    if not reverse:
        return jnp.einsum('lij,lhpj->lhpi', rot, pts) + trsl[:, None, None, :]
    return jnp.einsum('lji,lhpj->lhpi', rot, pts - trsl[:, None, None, :])


# ---------------------------------------------------------------------------
# Module
# ---------------------------------------------------------------------------

def init_ipa_params(key, c_s, c_z, head_dim, n_heads, n_qpnts, n_vpnts):
    n_dims_shid = n_heads * (c_z + head_dim + n_vpnts * 3 + n_vpnts)
    ws = math.log(math.e - 1.0)
    keys = jax.random.split(key, 11)

    def w(k, out_dim, in_dim, scale=0.05):
        return (scale * jax.random.normal(k, (out_dim, in_dim))).astype(jnp.float32)

    return {
        'wq':  w(keys[0], n_heads * head_dim, c_s),
        'wk':  w(keys[1], n_heads * head_dim, c_s),
        'wv':  w(keys[2], n_heads * head_dim, c_s),
        'wqp': w(keys[3], n_heads * n_qpnts * 3, c_s),
        'wkp': w(keys[4], n_heads * n_qpnts * 3, c_s),
        'wvp': w(keys[5], n_heads * n_vpnts * 3, c_s),
        'wb':  w(keys[6], n_heads, c_z),
        'ws_w': w(keys[7], c_s, n_dims_shid),
        'ws_b': jnp.zeros((c_s,), jnp.float32),
        'scale': jnp.full((n_heads,), ws, jnp.float32),
        'ln1_g': jnp.ones((c_s,), jnp.float32),
        'ln1_b': jnp.zeros((c_s,), jnp.float32),
        'mlp1_w': w(keys[8], c_s, c_s), 'mlp1_b': jnp.zeros((c_s,), jnp.float32),
        'mlp2_w': w(keys[9], c_s, c_s), 'mlp2_b': jnp.zeros((c_s,), jnp.float32),
        'mlp3_w': w(keys[10], c_s, c_s), 'mlp3_b': jnp.zeros((c_s,), jnp.float32),
        'ln2_g': jnp.ones((c_s,), jnp.float32),
        'ln2_b': jnp.zeros((c_s,), jnp.float32),
    }


def make_invariant_point_attention(c_s, c_z, head_dim, n_heads, n_qpnts, n_vpnts):
    n_dims_shid = n_heads * (c_z + head_dim + n_vpnts * 3 + n_vpnts)
    wc = math.sqrt(2.0 / (9.0 * n_qpnts))
    wl = math.sqrt(1.0 / 3.0)
    D, Qp, Vp, H = head_dim, n_qpnts, n_vpnts, n_heads
    nc = D + Vp * 3                       # packed [v | vp] width per head
    ncp = _ru(nc, 128)                    # lane-padded -> unmasked stores

    # generation-aware VMEM budget (v7x: 64 MiB per core; v5e/v6e: 128 MiB)
    cap = _vmem_capacity_bytes()
    budget = int(cap * 0.60)
    limit = min(int(cap * 0.85), 112 * 1024 * 1024)
    buffered = _buffered_supported()      # probed eagerly, outside jit

    def forward(params, s, z, quat_tns, trsl_tns):
        n_smpls, L, _ = s.shape
        assert n_smpls == 1, "batch size must be 1 in <InvPntAttn>"
        s0 = s[0]                          # (L, c_s)
        zp = z[0]                          # (L, L, c_z)  -- natural layout
        quat = quat_tns[0]                 # (L, 4)
        trsl = trsl_tns[0]                 # (L, 3)

        # --- six s-projections fused into one lane-dense bf16 matmul ---
        w_cat = jnp.concatenate(
            [params['wq'], params['wk'], params['wv'],
             params['wqp'], params['wkp'], params['wvp']], axis=0)
        proj = linear_pallas(s0, w_cat)                        # (L, P) f32
        o1 = H * D
        o2 = 2 * H * D
        o3 = 3 * H * D
        o4 = o3 + H * Qp * 3
        o5 = o4 + H * Qp * 3
        o6 = o5 + H * Vp * 3
        q = proj[:, :o1].reshape(L, H, D)
        k = proj[:, o1:o2].reshape(L, H, D)
        v = proj[:, o2:o3].reshape(L, H, D)
        qp = proj[:, o3:o4].reshape(L, H, Qp, 3)
        kp = proj[:, o4:o5].reshape(L, H, Qp, 3)
        vp = proj[:, o5:o6].reshape(L, H, Vp, 3)

        # --- local -> global frame mapping of points (cheap O(L) XLA glue) ---
        rot = quat2rot(quat)                                   # (L, 3, 3)
        qp_g = apply_trans(qp, rot, trsl)                      # (L, H, Qp, 3)
        kp_g = apply_trans(kp, rot, trsl)
        vp_g = apply_trans(vp, rot, trsl)                      # (L, H, Vp, 3)

        # --- augmented query / key rows: one matmul covers QK + point-QK ---
        coef = 0.5 * wc * jax.nn.softplus(params['scale'])     # (H,)
        pscale = jnp.sqrt(2.0 * wl * coef)                     # (H,)
        qpf = qp_g.reshape(L, H, Qp * 3)
        kpf = kp_g.reshape(L, H, Qp * 3)
        qsq = -wl * coef[None, :] * jnp.sum(qpf * qpf, axis=-1)   # (L, H)
        ksq = -wl * coef[None, :] * jnp.sum(kpf * kpf, axis=-1)   # (L, H)
        ones = jnp.ones((L, H), jnp.float32)
        qca = jnp.concatenate(
            [q * (wl / math.sqrt(D)), qpf * pscale[None, :, None],
             qsq[..., None], ones[..., None]], axis=-1)        # (L, H, Dca)
        kca = jnp.concatenate(
            [k, kpf * pscale[None, :, None],
             ones[..., None], ksq[..., None]], axis=-1)        # (L, H, Dca)
        qca = jnp.transpose(qca, (1, 0, 2))                    # (H, L, Dca)
        kca = jnp.transpose(kca, (1, 2, 0))                    # (H, Dca, L)

        # packed values [v | vp_global], head-major, lane-padded to 128
        vvp = jnp.concatenate([v, vp_g.reshape(L, H, Vp * 3)], axis=-1)
        vvp = jnp.pad(vvp, ((0, 0), (0, 0), (0, ncp - nc)))
        vvp = jnp.transpose(vvp, (1, 0, 2))                    # (H, L, ncp)

        wb_scaled = wl * params['wb']                          # (H, c_z)

        # --- fused attention core (bias, logits, softmax, aggregations) ---
        op, ovvp_hm = ipa_attention_pallas(
            qca, kca, vvp, zp, wb_scaled,
            buffered=buffered, budget=budget, limit=limit)
        # op: (L, H, c_z) f32 ; ovvp_hm: (H, L, ncp) f32

        ovvp = jnp.transpose(ovvp_hm, (1, 0, 2))[:, :, :nc]    # (L, H, nc)
        ov = ovvp[..., :D]                                     # (L, H, D)
        ovp_g = ovvp[..., D:].reshape(L, H, Vp, 3)
        ovp = apply_trans(ovp_g, rot, trsl, reverse=True)      # (L, H, Vp, 3)
        ovp_norm = jnp.sqrt(jnp.sum(ovp * ovp, axis=-1))       # (L, H, Vp)
        shid = jnp.concatenate(
            [op, ov, ovp.reshape(L, H, Vp * 3), ovp_norm], axis=-1)
        shid = shid.reshape(L, n_dims_shid)

        # --- fused tail: residual + LN + 3-layer ReLU MLP + residual + LN ---
        # drop_1 / drop_2 are identity in eval mode (no RNG / training flag)
        s_out = ipa_tail_pallas(
            s0, shid,
            jnp.transpose(params['ws_w']), params['ws_b'],
            params['ln1_g'], params['ln1_b'],
            jnp.transpose(params['mlp1_w']), params['mlp1_b'],
            jnp.transpose(params['mlp2_w']), params['mlp2_b'],
            jnp.transpose(params['mlp3_w']), params['mlp3_b'],
            params['ln2_g'], params['ln2_b'])
        return s_out[None]                                     # (1, L, c_s)

    return forward


if __name__ == "__main__":
    # small shapes consistent with the module (batch must be 1)
    c_s, c_z = 64, 32
    head_dim, n_heads = 8, 4
    n_qpnts, n_vpnts = 4, 8
    L = 16

    key = jax.random.PRNGKey(0)
    k_par, k_s, k_z, k_q, k_t = jax.random.split(key, 5)
    params = init_ipa_params(k_par, c_s, c_z, head_dim, n_heads, n_qpnts, n_vpnts)
    s = 0.5 * jax.random.normal(k_s, (1, L, c_s), jnp.float32)
    z = 0.5 * jax.random.normal(k_z, (1, L, L, c_z), jnp.float32)
    quat_tns = jax.random.normal(k_q, (1, L, 4), jnp.float32)
    trsl_tns = jax.random.normal(k_t, (1, L, 3), jnp.float32)

    fwd = jax.jit(make_invariant_point_attention(
        c_s, c_z, head_dim, n_heads, n_qpnts, n_vpnts))
    out = fwd(params, s, z, quat_tns, trsl_tns)
    out = jax.block_until_ready(out)

    assert out.shape == (1, L, c_s)
    assert bool(jnp.all(jnp.isfinite(out)))
    print("KERNEL_OK")
</pallas_src>

<mosaic_0001>
module attributes {stable_mosaic.version = 11 : i64} {
  func.func @_probe(%arg0: i32, %arg1: memref<8x128xf32, #tpu.memory_space<vmem>>, %arg2: memref<8x128xf32, #tpu.memory_space<vmem>>) attributes {dimension_semantics = [#tpu.dimension_semantics<arbitrary>], iteration_bounds = array<i64: 2>, scalar_prefetch = 0 : i64, scratch_operands = 0 : i64, tpu.core_type = #tpu.core_type<tc>, window_params = [{pipeline_mode = #tpu.pipeline_mode<synchronous>, transform_indices = @transform_0, window_bounds = array<i64: 8, 128>}, {transform_indices = @transform_1, window_bounds = array<i64: 8, 128>}]} {
    %c0 = arith.constant 0 : index
    %c0_0 = arith.constant 0 : index
    %0 = vector.load %arg1[%c0, %c0_0] : memref<8x128xf32, #tpu.memory_space<vmem>>, vector<8x128xf32>
    %cst = arith.constant 1.000000e+00 : f32
    %1 = vector.broadcast %cst : f32 to vector<8x128xf32>
    %2 = arith.addf %0, %1 : vector<8x128xf32>
    %c0_1 = arith.constant 0 : index
    %c0_2 = arith.constant 0 : index
    %3 = vector.load %arg2[%c0_1, %c0_2] : memref<8x128xf32, #tpu.memory_space<vmem>>, vector<8x128xf32>
    tpu.vector_store %arg2[%c0_1, %c0_2], %2 {strides = array<i32>} : memref<8x128xf32, #tpu.memory_space<vmem>>, vector<8x128xf32>,
    return
  }
  func.func @transform_0(%arg0: i32) -> (i32, i32) {
    %c0_i32 = arith.constant 0 : i32
    %c0_i32_0 = arith.constant 0 : i32
    %c0_i32_1 = arith.constant 0 : i32
    return %c0_i32, %c0_i32_0 : i32, i32
  }
  func.func @transform_1(%arg0: i32) -> (i32, i32) {
    %c0_i32 = arith.constant 0 : i32
    %c0_i32_0 = arith.constant 0 : i32
    return %arg0, %c0_i32 : i32, i32
  }
}

module attributes {stable_mosaic.version = 11 : i64} {
  func.func @_linear_kernel(%arg0: i32, %arg1: memref<16x64xbf16, #tpu.memory_space<vmem>>, %arg2: memref<64x288xbf16, #tpu.memory_space<vmem>>, %arg3: memref<1x288xf32, #tpu.memory_space<vmem>>, %arg4: memref<16x288xf32, #tpu.memory_space<vmem>>) attributes {dimension_semantics = [#tpu.dimension_semantics<parallel>], iteration_bounds = array<i64: 1>, scalar_prefetch = 0 : i64, scratch_operands = 0 : i64, tpu.core_type = #tpu.core_type<tc>, window_params = [{transform_indices = @transform_0, window_bounds = array<i64: 16, 64>}, {pipeline_mode = #tpu.pipeline_mode<synchronous>, transform_indices = @transform_1, window_bounds = array<i64: 64, 288>}, {pipeline_mode = #tpu.pipeline_mode<synchronous>, transform_indices = @transform_2, window_bounds = array<i64: 1, 288>}, {transform_indices = @transform_3, window_bounds = array<i64: 16, 288>}]} {
    %c0 = arith.constant 0 : index
    %c0_0 = arith.constant 0 : index
    %0 = vector.load %arg1[%c0, %c0_0] : memref<16x64xbf16, #tpu.memory_space<vmem>>, vector<16x64xbf16>
    %c0_1 = arith.constant 0 : index
    %c0_2 = arith.constant 0 : index
    %1 = vector.load %arg2[%c0_1, %c0_2] : memref<64x288xbf16, #tpu.memory_space<vmem>>, vector<64x288xbf16>
    %cst = arith.constant dense<0.000000e+00> : vector<16x288xf32>
    %2 = tpu.matmul %0, %1, %cst {dimension_numbers = #tpu.dot_dimension_numbers<[1], [0], [0], [1], [0, 0, 1, 1], [], []>} : vector<16x64xbf16>, vector<64x288xbf16>, vector<16x288xf32> -> vector<16x288xf32>
    %c0_3 = arith.constant 0 : index
    %c0_4 = arith.constant 0 : index
    %3 = vector.load %arg3[%c0_3, %c0_4] : memref<1x288xf32, #tpu.memory_space<vmem>>, vector<1x288xf32>
    %4 = vector.broadcast %3 : vector<1x288xf32> to vector<16x288xf32>
    %5 = arith.addf %2, %4 : vector<16x288xf32>
    %c0_5 = arith.constant 0 : index
    %c0_6 = arith.constant 0 : index
    %6 = vector.load %arg4[%c0_5, %c0_6] : memref<16x288xf32, #tpu.memory_space<vmem>>, vector<16x288xf32>
    tpu.vector_store %arg4[%c0_5, %c0_6], %5 {strides = array<i32>} : memref<16x288xf32, #tpu.memory_space<vmem>>, vector<16x288xf32>,
    return
  }
  func.func @transform_0(%arg0: i32) -> (i32, i32) {
    %c0_i32 = arith.constant 0 : i32
    %c0_i32_0 = arith.constant 0 : i32
    return %arg0, %c0_i32 : i32, i32
  }
  func.func @transform_1(%arg0: i32) -> (i32, i32) {
    %c0_i32 = arith.constant 0 : i32
    %c0_i32_0 = arith.constant 0 : i32
    %c0_i32_1 = arith.constant 0 : i32
    return %c0_i32, %c0_i32_0 : i32, i32
  }
  func.func @transform_2(%arg0: i32) -> (i32, i32) {
    %c0_i32 = arith.constant 0 : i32
    %c0_i32_0 = arith.constant 0 : i32
    %c0_i32_1 = arith.constant 0 : i32
    return %c0_i32, %c0_i32_0 : i32, i32
  }
  func.func @transform_3(%arg0: i32) -> (i32, i32) {
    %c0_i32 = arith.constant 0 : i32
    %c0_i32_0 = arith.constant 0 : i32
    return %arg0, %c0_i32 : i32, i32
  }
}

module attributes {stable_mosaic.version = 11 : i64} {
  func.func @_ipa_attn_kernel(%arg0: i32, %arg1: memref<4x8x22xf32, #tpu.memory_space<vmem>>, %arg2: memref<4x22x16xf32, #tpu.memory_space<vmem>>, %arg3: memref<4x16x128xbf16, #tpu.memory_space<vmem>>, %arg4: memref<8x16x32xbf16, #tpu.memory_space<vmem>>, %arg5: memref<8x4x32xbf16, #tpu.memory_space<vmem>>, %arg6: memref<8x4x32xf32, #tpu.memory_space<vmem>>, %arg7: memref<4x8x128xf32, #tpu.memory_space<vmem>>) attributes {dimension_semantics = [#tpu.dimension_semantics<parallel>], iteration_bounds = array<i64: 2>, scalar_prefetch = 0 : i64, scratch_operands = 0 : i64, tpu.core_type = #tpu.core_type<tc>, window_params = [{transform_indices = @transform_0, window_bounds = array<i64: 4, 8, 22>}, {pipeline_mode = #tpu.pipeline_mode<synchronous>, transform_indices = @transform_1, window_bounds = array<i64: 4, 22, 16>}, {pipeline_mode = #tpu.pipeline_mode<synchronous>, transform_indices = @transform_2, window_bounds = array<i64: 4, 16, 128>}, {transform_indices = @transform_3, window_bounds = array<i64: 8, 16, 32>}, {pipeline_mode = #tpu.pipeline_mode<synchronous>, transform_indices = @transform_4, window_bounds = array<i64: 8, 4, 32>}, {transform_indices = @transform_5, window_bounds = array<i64: 8, 4, 32>}, {transform_indices = @transform_6, window_bounds = array<i64: 4, 8, 128>}]} {
    %c0 = arith.constant 0 : index
    %c0_0 = arith.constant 0 : index
    %c0_1 = arith.constant 0 : index
    %0 = vector.load %arg4[%c0, %c0_0, %c0_1] : memref<8x16x32xbf16, #tpu.memory_space<vmem>>, vector<8x16x32xbf16>
    %c0_2 = arith.constant 0 : index
    %c0_3 = arith.constant 0 : index
    %c0_4 = arith.constant 0 : index
    %1 = vector.load %arg5[%c0_2, %c0_3, %c0_4] : memref<8x4x32xbf16, #tpu.memory_space<vmem>>, vector<8x4x32xbf16>
    %cst = arith.constant dense<0.000000e+00> : vector<8x4x16xf32>
    %2 = tpu.matmul %1, %0, %cst {dimension_numbers = #tpu.dot_dimension_numbers<[2], [2], [1], [1], [0, 0, 0, 1, 1, 1], [0], [0]>} : vector<8x4x32xbf16>, vector<8x16x32xbf16>, vector<8x4x16xf32> -> vector<8x4x16xf32>
    %c0_5 = arith.constant 0 : index
    %c0_6 = arith.constant 0 : index
    %c0_7 = arith.constant 0 : index
    %3 = vector.load %arg1[%c0_5, %c0_6, %c0_7] : memref<4x8x22xf32, #tpu.memory_space<vmem>>, vector<4x8x22xf32>
    %c0_8 = arith.constant 0 : index
    %c0_9 = arith.constant 0 : index
    %c0_10 = arith.constant 0 : index
    %4 = vector.load %arg2[%c0_8, %c0_9, %c0_10] : memref<4x22x16xf32, #tpu.memory_space<vmem>>, vector<4x22x16xf32>
    %cst_11 = arith.constant dense<0.000000e+00> : vector<4x8x16xf32>
    %5 = tpu.matmul %3, %4, %cst_11 {dimension_numbers = #tpu.dot_dimension_numbers<[2], [1], [1], [2], [0, 0, 0, 1, 1, 2], [0], [0]>} : vector<4x8x22xf32>, vector<4x22x16xf32>, vector<4x8x16xf32> -> vector<4x8x16xf32>
    %6 = tpu.transpose %5, [1, 0, 2] : vector<4x8x16xf32> -> vector<8x4x16xf32>
    %7 = arith.addf %6, %2 : vector<8x4x16xf32>
    %cst_12 = arith.constant dense<0xFF800000> : vector<8x4xf32>
    %8 = vector.multi_reduction <maximumf>, %7, %cst_12 [2] : vector<8x4x16xf32> to vector<8x4xf32>
    %9 = vector.shape_cast %8 : vector<8x4xf32> to vector<8x4x1xf32>
    %10 = vector.broadcast %9 : vector<8x4x1xf32> to vector<8x4x16xf32>
    %11 = arith.subf %7, %10 : vector<8x4x16xf32>
    %12 = math.exp %11 : vector<8x4x16xf32>
    %cst_13 = arith.constant dense<0.000000e+00> : vector<8x4xf32>
    %13 = vector.multi_reduction <add>, %12, %cst_13 [2] : vector<8x4x16xf32> to vector<8x4xf32>
    %14 = vector.shape_cast %13 : vector<8x4xf32> to vector<8x4x1xf32>
    %15 = tpu.reciprocal %14 {approx = true} : vector<8x4x1xf32> -> vector<8x4x1xf32>
    %16 = arith.truncf %12 : vector<8x4x16xf32> to vector<8x4x16xbf16>
    %cst_14 = arith.constant dense<0.000000e+00> : vector<8x4x32xf32>
    %17 = tpu.matmul %16, %0, %cst_14 {dimension_numbers = #tpu.dot_dimension_numbers<[2], [1], [1], [2], [0, 0, 0, 1, 1, 2], [0], [0]>} : vector<8x4x16xbf16>, vector<8x16x32xbf16>, vector<8x4x32xf32> -> vector<8x4x32xf32>
    %18 = vector.broadcast %15 : vector<8x4x1xf32> to vector<8x4x32xf32>
    %19 = arith.mulf %17, %18 : vector<8x4x32xf32>
    %c0_15 = arith.constant 0 : index
    %c0_16 = arith.constant 0 : index
    %c0_17 = arith.constant 0 : index
    %20 = vector.load %arg6[%c0_15, %c0_16, %c0_17] : memref<8x4x32xf32, #tpu.memory_space<vmem>>, vector<8x4x32xf32>
    tpu.vector_store %arg6[%c0_15, %c0_16, %c0_17], %19 {strides = array<i32>} : memref<8x4x32xf32, #tpu.memory_space<vmem>>, vector<8x4x32xf32>,
    %21 = tpu.transpose %16, [1, 0, 2] : vector<8x4x16xbf16> -> vector<4x8x16xbf16>
    %c0_18 = arith.constant 0 : index
    %c0_19 = arith.constant 0 : index
    %c0_20 = arith.constant 0 : index
    %22 = vector.load %arg3[%c0_18, %c0_19, %c0_20] : memref<4x16x128xbf16, #tpu.memory_space<vmem>>, vector<4x16x128xbf16>
    %cst_21 = arith.constant dense<0.000000e+00> : vector<4x8x128xf32>
    %23 = tpu.matmul %21, %22, %cst_21 {dimension_numbers = #tpu.dot_dimension_numbers<[2], [1], [1], [2], [0, 0, 0, 1, 1, 2], [0], [0]>} : vector<4x8x16xbf16>, vector<4x16x128xbf16>, vector<4x8x128xf32> -> vector<4x8x128xf32>
    %24 = vector.shape_cast %15 : vector<8x4x1xf32> to vector<8x4xf32>
    %25 = tpu.transpose %24, [1, 0] : vector<8x4xf32> -> vector<4x8xf32>
    %26 = vector.shape_cast %25 : vector<4x8xf32> to vector<4x8x1xf32>
    %27 = vector.broadcast %26 : vector<4x8x1xf32> to vector<4x8x128xf32>
    %28 = arith.mulf %23, %27 : vector<4x8x128xf32>
    %c0_22 = arith.constant 0 : index
    %c0_23 = arith.constant 0 : index
    %c0_24 = arith.constant 0 : index
    %29 = vector.load %arg7[%c0_22, %c0_23, %c0_24] : memref<4x8x128xf32, #tpu.memory_space<vmem>>, vector<4x8x128xf32>
    tpu.vector_store %arg7[%c0_22, %c0_23, %c0_24], %28 {strides = array<i32>} : memref<4x8x128xf32, #tpu.memory_space<vmem>>, vector<4x8x128xf32>,
    return
  }
  func.func @transform_0(%arg0: i32) -> (i32, i32, i32) {
    %c0_i32 = arith.constant 0 : i32
    %c0_i32_0 = arith.constant 0 : i32
    %c0_i32_1 = arith.constant 0 : i32
    return %c0_i32, %arg0, %c0_i32_0 : i32, i32, i32
  }
  func.func @transform_1(%arg0: i32) -> (i32, i32, i32) {
    %c0_i32 = arith.constant 0 : i32
    %c0_i32_0 = arith.constant 0 : i32
    %c0_i32_1 = arith.constant 0 : i32
    %c0_i32_2 = arith.constant 0 : i32
    return %c0_i32, %c0_i32_0, %c0_i32_1 : i32, i32, i32
  }
  func.func @transform_2(%arg0: i32) -> (i32, i32, i32) {
    %c0_i32 = arith.constant 0 : i32
    %c0_i32_0 = arith.constant 0 : i32
    %c0_i32_1 = arith.constant 0 : i32
    %c0_i32_2 = arith.constant 0 : i32
    return %c0_i32, %c0_i32_0, %c0_i32_1 : i32, i32, i32
  }
  func.func @transform_3(%arg0: i32) -> (i32, i32, i32) {
    %c0_i32 = arith.constant 0 : i32
    %c0_i32_0 = arith.constant 0 : i32
    %c0_i32_1 = arith.constant 0 : i32
    return %arg0, %c0_i32, %c0_i32_0 : i32, i32, i32
  }
  func.func @transform_4(%arg0: i32) -> (i32, i32, i32) {
    %c0_i32 = arith.constant 0 : i32
    %c0_i32_0 = arith.constant 0 : i32
    %c0_i32_1 = arith.constant 0 : i32
    %c0_i32_2 = arith.constant 0 : i32
    return %c0_i32, %c0_i32_0, %c0_i32_1 : i32, i32, i32
  }
  func.func @transform_5(%arg0: i32) -> (i32, i32, i32) {
    %c0_i32 = arith.constant 0 : i32
    %c0_i32_0 = arith.constant 0 : i32
    %c0_i32_1 = arith.constant 0 : i32
    return %arg0, %c0_i32, %c0_i32_0 : i32, i32, i32
  }
  func.func @transform_6(%arg0: i32) -> (i32, i32, i32) {
    %c0_i32 = arith.constant 0 : i32
    %c0_i32_0 = arith.constant 0 : i32
    %c0_i32_1 = arith.constant 0 : i32
    return %c0_i32, %arg0, %c0_i32_0 : i32, i32, i32
  }
}

module attributes {stable_mosaic.version = 11 : i64} {
  func.func @_tail_kernel(%arg0: i32, %arg1: memref<16x64xf32, #tpu.memory_space<vmem>>, %arg2: memref<16x288xbf16, #tpu.memory_space<vmem>>, %arg3: memref<288x64xbf16, #tpu.memory_space<vmem>>, %arg4: memref<1x64xf32, #tpu.memory_space<vmem>>, %arg5: memref<1x64xf32, #tpu.memory_space<vmem>>, %arg6: memref<1x64xf32, #tpu.memory_space<vmem>>, %arg7: memref<64x64xf32, #tpu.memory_space<vmem>>, %arg8: memref<1x64xf32, #tpu.memory_space<vmem>>, %arg9: memref<64x64xf32, #tpu.memory_space<vmem>>, %arg10: memref<1x64xf32, #tpu.memory_space<vmem>>, %arg11: memref<64x64xf32, #tpu.memory_space<vmem>>, %arg12: memref<1x64xf32, #tpu.memory_space<vmem>>, %arg13: memref<1x64xf32, #tpu.memory_space<vmem>>, %arg14: memref<1x64xf32, #tpu.memory_space<vmem>>, %arg15: memref<16x64xf32, #tpu.memory_space<vmem>>) attributes {dimension_semantics = [#tpu.dimension_semantics<parallel>], iteration_bounds = array<i64: 1>, scalar_prefetch = 0 : i64, scratch_operands = 0 : i64, tpu.core_type = #tpu.core_type<tc>, window_params = [{transform_indices = @transform_0, window_bounds = array<i64: 16, 64>}, {transform_indices = @transform_1, window_bounds = array<i64: 16, 288>}, {pipeline_mode = #tpu.pipeline_mode<synchronous>, transform_indices = @transform_2, window_bounds = array<i64: 288, 64>}, {pipeline_mode = #tpu.pipeline_mode<synchronous>, transform_indices = @transform_3, window_bounds = array<i64: 1, 64>}, {pipeline_mode = #tpu.pipeline_mode<synchronous>, transform_indices = @transform_4, window_bounds = array<i64: 1, 64>}, {pipeline_mode = #tpu.pipeline_mode<synchronous>, transform_indices = @transform_5, window_bounds = array<i64: 1, 64>}, {pipeline_mode = #tpu.pipeline_mode<synchronous>, transform_indices = @transform_6, window_bounds = array<i64: 64, 64>}, {pipeline_mode = #tpu.pipeline_mode<synchronous>, transform_indices = @transform_7, window_bounds = array<i64: 1, 64>}, {pipeline_mode = #tpu.pipeline_mode<synchronous>, transform_indices = @transform_8, window_bounds = array<i64: 64, 64>}, {pipeline_mode = #tpu.pipeline_mode<synchronous>, transform_indices = @transform_9, window_bounds = array<i64: 1, 64>}, {pipeline_mode = #tpu.pipeline_mode<synchronous>, transform_indices = @transform_10, window_bounds = array<i64: 64, 64>}, {pipeline_mode = #tpu.pipeline_mode<synchronous>, transform_indices = @transform_11, window_bounds = array<i64: 1, 64>}, {pipeline_mode = #tpu.pipeline_mode<synchronous>, transform_indices = @transform_12, window_bounds = array<i64: 1, 64>}, {pipeline_mode = #tpu.pipeline_mode<synchronous>, transform_indices = @transform_13, window_bounds = array<i64: 1, 64>}, {transform_indices = @transform_14, window_bounds = array<i64: 16, 64>}]} {
    %c0 = arith.constant 0 : index
    %c0_0 = arith.constant 0 : index
    %0 = vector.load %arg1[%c0, %c0_0] : memref<16x64xf32, #tpu.memory_space<vmem>>, vector<16x64xf32>
    %c0_1 = arith.constant 0 : index
    %c0_2 = arith.constant 0 : index
    %1 = vector.load %arg2[%c0_1, %c0_2] : memref<16x288xbf16, #tpu.memory_space<vmem>>, vector<16x288xbf16>
    %c0_3 = arith.constant 0 : index
    %c0_4 = arith.constant 0 : index
    %2 = vector.load %arg3[%c0_3, %c0_4] : memref<288x64xbf16, #tpu.memory_space<vmem>>, vector<288x64xbf16>
    %cst = arith.constant dense<0.000000e+00> : vector<16x64xf32>
    %3 = tpu.matmul %1, %2, %cst {dimension_numbers = #tpu.dot_dimension_numbers<[1], [0], [0], [1], [0, 0, 1, 1], [], []>} : vector<16x288xbf16>, vector<288x64xbf16>, vector<16x64xf32> -> vector<16x64xf32>
    %4 = arith.addf %0, %3 : vector<16x64xf32>
    %c0_5 = arith.constant 0 : index
    %c0_6 = arith.constant 0 : index
    %5 = vector.load %arg4[%c0_5, %c0_6] : memref<1x64xf32, #tpu.memory_space<vmem>>, vector<1x64xf32>
    %6 = vector.broadcast %5 : vector<1x64xf32> to vector<16x64xf32>
    %7 = arith.addf %4, %6 : vector<16x64xf32>
    %c0_7 = arith.constant 0 : index
    %c0_8 = arith.constant 0 : index
    %8 = vector.load %arg5[%c0_7, %c0_8] : memref<1x64xf32, #tpu.memory_space<vmem>>, vector<1x64xf32>
    %c0_9 = arith.constant 0 : index
    %c0_10 = arith.constant 0 : index
    %9 = vector.load %arg6[%c0_9, %c0_10] : memref<1x64xf32, #tpu.memory_space<vmem>>, vector<1x64xf32>
    %cst_11 = arith.constant dense<0.000000e+00> : vector<16xf32>
    %10 = vector.multi_reduction <add>, %7, %cst_11 [1] : vector<16x64xf32> to vector<16xf32>
    %11 = vector.shape_cast %10 : vector<16xf32> to vector<16x1xf32>
    %cst_12 = arith.constant 6.400000e+01 : f32
    %12 = vector.broadcast %cst_12 : f32 to vector<16x1xf32>
    %13 = arith.divf %11, %12 : vector<16x1xf32>
    %14 = vector.broadcast %13 : vector<16x1xf32> to vector<16x64xf32>
    %15 = arith.subf %7, %14 : vector<16x64xf32>
    %16 = arith.mulf %15, %15 : vector<16x64xf32>
    %cst_13 = arith.constant dense<0.000000e+00> : vector<16xf32>
    %17 = vector.multi_reduction <add>, %16, %cst_13 [1] : vector<16x64xf32> to vector<16xf32>
    %18 = vector.shape_cast %17 : vector<16xf32> to vector<16x1xf32>
    %cst_14 = arith.constant 6.400000e+01 : f32
    %19 = vector.broadcast %cst_14 : f32 to vector<16x1xf32>
    %20 = arith.divf %18, %19 : vector<16x1xf32>
    %cst_15 = arith.constant 9.99999974E-6 : f32
    %21 = vector.broadcast %cst_15 : f32 to vector<16x1xf32>
    %22 = arith.addf %20, %21 : vector<16x1xf32>
    %23 = math.rsqrt %22 : vector<16x1xf32>
    %24 = vector.broadcast %23 : vector<16x1xf32> to vector<16x64xf32>
    %25 = arith.mulf %15, %24 : vector<16x64xf32>
    %26 = vector.broadcast %8 : vector<1x64xf32> to vector<16x64xf32>
    %27 = arith.mulf %25, %26 : vector<16x64xf32>
    %28 = vector.broadcast %9 : vector<1x64xf32> to vector<16x64xf32>
    %29 = arith.addf %27, %28 : vector<16x64xf32>
    %c0_16 = arith.constant 0 : index
    %c0_17 = arith.constant 0 : index
    %30 = vector.load %arg7[%c0_16, %c0_17] : memref<64x64xf32, #tpu.memory_space<vmem>>, vector<64x64xf32>
    %cst_18 = arith.constant dense<0.000000e+00> : vector<16x64xf32>
    %31 = tpu.matmul %29, %30, %cst_18 {dimension_numbers = #tpu.dot_dimension_numbers<[1], [0], [0], [1], [0, 0, 1, 1], [], []>} : vector<16x64xf32>, vector<64x64xf32>, vector<16x64xf32> -> vector<16x64xf32>
    %c0_19 = arith.constant 0 : index
    %c0_20 = arith.constant 0 : index
    %32 = vector.load %arg8[%c0_19, %c0_20] : memref<1x64xf32, #tpu.memory_space<vmem>>, vector<1x64xf32>
    %33 = vector.broadcast %32 : vector<1x64xf32> to vector<16x64xf32>
    %34 = arith.addf %31, %33 : vector<16x64xf32>
    %cst_21 = arith.constant 0.000000e+00 : f32
    %35 = vector.broadcast %cst_21 : f32 to vector<16x64xf32>
    %36 = arith.maximumf %34, %35 : vector<16x64xf32>
    %c0_22 = arith.constant 0 : index
    %c0_23 = arith.constant 0 : index
    %37 = vector.load %arg9[%c0_22, %c0_23] : memref<64x64xf32, #tpu.memory_space<vmem>>, vector<64x64xf32>
    %cst_24 = arith.constant dense<0.000000e+00> : vector<16x64xf32>
    %38 = tpu.matmul %36, %37, %cst_24 {dimension_numbers = #tpu.dot_dimension_numbers<[1], [0], [0], [1], [0, 0, 1, 1], [], []>} : vector<16x64xf32>, vector<64x64xf32>, vector<16x64xf32> -> vector<16x64xf32>
    %c0_25 = arith.constant 0 : index
    %c0_26 = arith.constant 0 : index
    %39 = vector.load %arg10[%c0_25, %c0_26] : memref<1x64xf32, #tpu.memory_space<vmem>>, vector<1x64xf32>
    %40 = vector.broadcast %39 : vector<1x64xf32> to vector<16x64xf32>
    %41 = arith.addf %38, %40 : vector<16x64xf32>
    %cst_27 = arith.constant 0.000000e+00 : f32
    %42 = vector.broadcast %cst_27 : f32 to vector<16x64xf32>
    %43 = arith.maximumf %41, %42 : vector<16x64xf32>
    %c0_28 = arith.constant 0 : index
    %c0_29 = arith.constant 0 : index
    %44 = vector.load %arg11[%c0_28, %c0_29] : memref<64x64xf32, #tpu.memory_space<vmem>>, vector<64x64xf32>
    %cst_30 = arith.constant dense<0.000000e+00> : vector<16x64xf32>
    %45 = tpu.matmul %43, %44, %cst_30 {dimension_numbers = #tpu.dot_dimension_numbers<[1], [0], [0], [1], [0, 0, 1, 1], [], []>} : vector<16x64xf32>, vector<64x64xf32>, vector<16x64xf32> -> vector<16x64xf32>
    %c0_31 = arith.constant 0 : index
    %c0_32 = arith.constant 0 : index
    %46 = vector.load %arg12[%c0_31, %c0_32] : memref<1x64xf32, #tpu.memory_space<vmem>>, vector<1x64xf32>
    %47 = vector.broadcast %46 : vector<1x64xf32> to vector<16x64xf32>
    %48 = arith.addf %45, %47 : vector<16x64xf32>
    %49 = arith.addf %29, %48 : vector<16x64xf32>
    %c0_33 = arith.constant 0 : index
    %c0_34 = arith.constant 0 : index
    %50 = vector.load %arg13[%c0_33, %c0_34] : memref<1x64xf32, #tpu.memory_space<vmem>>, vector<1x64xf32>
    %c0_35 = arith.constant 0 : index
    %c0_36 = arith.constant 0 : index
    %51 = vector.load %arg14[%c0_35, %c0_36] : memref<1x64xf32, #tpu.memory_space<vmem>>, vector<1x64xf32>
    %cst_37 = arith.constant dense<0.000000e+00> : vector<16xf32>
    %52 = vector.multi_reduction <add>, %49, %cst_37 [1] : vector<16x64xf32> to vector<16xf32>
    %53 = vector.shape_cast %52 : vector<16xf32> to vector<16x1xf32>
    %cst_38 = arith.constant 6.400000e+01 : f32
    %54 = vector.broadcast %cst_38 : f32 to vector<16x1xf32>
    %55 = arith.divf %53, %54 : vector<16x1xf32>
    %56 = vector.broadcast %55 : vector<16x1xf32> to vector<16x64xf32>
    %57 = arith.subf %49, %56 : vector<16x64xf32>
    %58 = arith.mulf %57, %57 : vector<16x64xf32>
    %cst_39 = arith.constant dense<0.000000e+00> : vector<16xf32>
    %59 = vector.multi_reduction <add>, %58, %cst_39 [1] : vector<16x64xf32> to vector<16xf32>
    %60 = vector.shape_cast %59 : vector<16xf32> to vector<16x1xf32>
    %cst_40 = arith.constant 6.400000e+01 : f32
    %61 = vector.broadcast %cst_40 : f32 to vector<16x1xf32>
    %62 = arith.divf %60, %61 : vector<16x1xf32>
    %cst_41 = arith.constant 9.99999974E-6 : f32
    %63 = vector.broadcast %cst_41 : f32 to vector<16x1xf32>
    %64 = arith.addf %62, %63 : vector<16x1xf32>
    %65 = math.rsqrt %64 : vector<16x1xf32>
    %66 = vector.broadcast %65 : vector<16x1xf32> to vector<16x64xf32>
    %67 = arith.mulf %57, %66 : vector<16x64xf32>
    %68 = vector.broadcast %50 : vector<1x64xf32> to vector<16x64xf32>
    %69 = arith.mulf %67, %68 : vector<16x64xf32>
    %70 = vector.broadcast %51 : vector<1x64xf32> to vector<16x64xf32>
    %71 = arith.addf %69, %70 : vector<16x64xf32>
    %c0_42 = arith.constant 0 : index
    %c0_43 = arith.constant 0 : index
    %72 = vector.load %arg15[%c0_42, %c0_43] : memref<16x64xf32, #tpu.memory_space<vmem>>, vector<16x64xf32>
    tpu.vector_store %arg15[%c0_42, %c0_43], %71 {strides = array<i32>} : memref<16x64xf32, #tpu.memory_space<vmem>>, vector<16x64xf32>,
    return
  }
  func.func @transform_0(%arg0: i32) -> (i32, i32) {
    %c0_i32 = arith.constant 0 : i32
    %c0_i32_0 = arith.constant 0 : i32
    return %arg0, %c0_i32 : i32, i32
  }
  func.func @transform_1(%arg0: i32) -> (i32, i32) {
    %c0_i32 = arith.constant 0 : i32
    %c0_i32_0 = arith.constant 0 : i32
    return %arg0, %c0_i32 : i32, i32
  }
  func.func @transform_2(%arg0: i32) -> (i32, i32) {
    %c0_i32 = arith.constant 0 : i32
    %c0_i32_0 = arith.constant 0 : i32
    %c0_i32_1 = arith.constant 0 : i32
    return %c0_i32, %c0_i32_0 : i32, i32
  }
  func.func @transform_3(%arg0: i32) -> (i32, i32) {
    %c0_i32 = arith.constant 0 : i32
    %c0_i32_0 = arith.constant 0 : i32
    %c0_i32_1 = arith.constant 0 : i32
    return %c0_i32, %c0_i32_0 : i32, i32
  }
  func.func @transform_4(%arg0: i32) -> (i32, i32) {
    %c0_i32 = arith.constant 0 : i32
    %c0_i32_0 = arith.constant 0 : i32
    %c0_i32_1 = arith.constant 0 : i32
    return %c0_i32, %c0_i32_0 : i32, i32
  }
  func.func @transform_5(%arg0: i32) -> (i32, i32) {
    %c0_i32 = arith.constant 0 : i32
    %c0_i32_0 = arith.constant 0 : i32
    %c0_i32_1 = arith.constant 0 : i32
    return %c0_i32, %c0_i32_0 : i32, i32
  }
  func.func @transform_6(%arg0: i32) -> (i32, i32) {
    %c0_i32 = arith.constant 0 : i32
    %c0_i32_0 = arith.constant 0 : i32
    %c0_i32_1 = arith.constant 0 : i32
    return %c0_i32, %c0_i32_0 : i32, i32
  }
  func.func @transform_7(%arg0: i32) -> (i32, i32) {
    %c0_i32 = arith.constant 0 : i32
    %c0_i32_0 = arith.constant 0 : i32
    %c0_i32_1 = arith.constant 0 : i32
    return %c0_i32, %c0_i32_0 : i32, i32
  }
  func.func @transform_8(%arg0: i32) -> (i32, i32) {
    %c0_i32 = arith.constant 0 : i32
    %c0_i32_0 = arith.constant 0 : i32
    %c0_i32_1 = arith.constant 0 : i32
    return %c0_i32, %c0_i32_0 : i32, i32
  }
  func.func @transform_9(%arg0: i32) -> (i32, i32) {
    %c0_i32 = arith.constant 0 : i32
    %c0_i32_0 = arith.constant 0 : i32
    %c0_i32_1 = arith.constant 0 : i32
    return %c0_i32, %c0_i32_0 : i32, i32
  }
  func.func @transform_10(%arg0: i32) -> (i32, i32) {
    %c0_i32 = arith.constant 0 : i32
    %c0_i32_0 = arith.constant 0 : i32
    %c0_i32_1 = arith.constant 0 : i32
    return %c0_i32, %c0_i32_0 : i32, i32
  }
  func.func @transform_11(%arg0: i32) -> (i32, i32) {
    %c0_i32 = arith.constant 0 : i32
    %c0_i32_0 = arith.constant 0 : i32
    %c0_i32_1 = arith.constant 0 : i32
    return %c0_i32, %c0_i32_0 : i32, i32
  }
  func.func @transform_12(%arg0: i32) -> (i32, i32) {
    %c0_i32 = arith.constant 0 : i32
    %c0_i32_0 = arith.constant 0 : i32
    %c0_i32_1 = arith.constant 0 : i32
    return %c0_i32, %c0_i32_0 : i32, i32
  }
  func.func @transform_13(%arg0: i32) -> (i32, i32) {
    %c0_i32 = arith.constant 0 : i32
    %c0_i32_0 = arith.constant 0 : i32
    %c0_i32_1 = arith.constant 0 : i32
    return %c0_i32, %c0_i32_0 : i32, i32
  }
  func.func @transform_14(%arg0: i32) -> (i32, i32) {
    %c0_i32 = arith.constant 0 : i32
    %c0_i32_0 = arith.constant 0 : i32
    return %arg0, %c0_i32 : i32, i32
  }
}

</mosaic_0001>

<bundles_post_ra>
// kernel: tpu_custom_call.1
= control target key start
LH: loop header
LB: loop body
LE: loop exit
PB: predicated region body
PF: predicated region fallthrough
CT: control target
= control target key end

     0   :  { %6 = vsyncpa [#allocation3], 0  ;;  %s441_s0 = inlined_call_operand.hbm [shape: f32[8,128], index: 0, kind: input, shape index: {}]   ;;  %s442_s1 = inlined_call_operand.hbm [shape: f32[16,128], index: 1, kind: output, shape index: {}]  }
   0x1   :  { %7 = vsyncpa [#allocation4], 0 }
   0x2   :  { %9 = vsyncpa [#allocation4 + $0x1], 0  ;;  %s357_s6 = smov 0   ;;  %s359_s7 = smov 0  }
   0x3   :  { %s361_s8 = smov 0   ;;  %s363_s9 = smov 0  }
   0x4 LB: > { %s378_s10 = sadd.s32 4294967295, %s344_s9   ;;  %s188_s11 = sadd.s32 4294967294, %s344_s9   ;;  %s344_s9 = sphi %s363_s9, %s448_s9   ;;  %s340_s8 = sphi %s361_s8, %s447_s8   ;;  %s336_s7 = sphi %s359_s7, %s446_s7   ;;  %s332_s6 = sphi %s357_s6, %s445_s6  }
   0x5   : > { %s382_s12 = sadd.s32 1, %s344_s9   ;;  %s43_s13 = sadd.s32 1, %s340_s8 }
   0x6   : > { %s40_s14 = ssub.s32 %s344_s9, %s382_s12  ;;  %p53_p0 = scmp.ne.s32.totalorder %s340_s8, %s336_s7 }
   0x7   : > { %p41_p1 = scmp.eq.s32.totalorder %s40_s14, 0  ;;  %p54_p2 = scmp.eq.s32.totalorder %s378_s10, 1 }
   0x8   : > { %p59_p3 = scmp.ne.s32.totalorder %s336_s7, %s332_s6  ;;  %p60_p4 = scmp.eq.s32.totalorder %s188_s11, 1 }
   0x9   : > { %s393_s15 = scalar_select %p41_p1, %s340_s8, %s43_s13  }
   0xa   : > { %p395_p5 = por %p54_p2, %p53_p0  ;;  %p399_p6 = por %p60_p4, %p59_p3 }
   0xb   : > { %p189_p7 = scmp.ge.s32.totalorder %s344_s9, 1  ;;  %p67_p8 = scmp.lt.s32.totalorder %s344_s9, 3 }
   0xc   : > { %p212_p9 = scmp.eq.s32.totalorder %s378_s10, 0  ;;  %s79_s20 = sshll.u32 %s441_s0, 4  ;;  %s80_s20 = int_to_ptr.hbm [resolvable:$true] %s79_s20 }
   0xd   : > { %p68_p10 = pnand %p189_p7, %p67_p8  ;;  %s346_s21 = smov [#allocation2]  }
   0xe   : > { %s81_s22 = sshll.u32 %s346_s21, 4  ;;  %s82_s22 = int_to_ptr.vmem [resolvable:$true] %s81_s22 }
   0xf   : > { %p204_p11 = pneg %p68_p10  ;;  %94 = sbr.rel (%p68_p10) target bundleno = 37 (0x25), region = 24 }
  0x11   : > { %p205_p12 = pnand %p212_p9, %p204_p11 }
  0x13   : > { %207 = dma.hbm_to_vmem [thread:$0]  (!%p205_p12), %s80_s20, 128, %s82_s22, [#allocation3]  }
  0x14   : > { %323 = dma.done.wait (%p212_p9), [#allocation3], 128  }
  0x15   : > { %325 = vsyncadd (%p212_p9), [#allocation3], 4294967168  ;;  %s107_s23 = sand.u32 1, %s336_s7   ;;  %s195_s24 = sshll.u32 %s378_s10, 3  ;;  %v110_v0 = vld [vmem:[#allocation2] sm:$0xff] }
  0x16   : > { %s193_s25 = sshll.u32 %s107_s23, 3  ;;  %s124_s28 = scalar_lea.hbm %s442_s1, %s195_s24  ;;  %v111_v1 = vadd.f32 1.0, %v110_v0 }
  0x17   : > { %s109_s29 = scalar_lea.vmem [#allocation5], %s193_s25  ;;  %s128_s2 = sshll.u32 %s124_s28, 4  ;;  %s129_s2 = int_to_ptr.hbm [resolvable:$true] %s128_s2 }
  0x18   : > { %s126_s30 = sshll.u32 %s109_s29, 4  ;;  %112 = vst [vmem:[%s109_s29] sm:$0xff] %v111_v1  ;;  %s114_s3 = scalar_lea.sflag [#allocation4], %s107_s23  ;;  %s127_s30 = int_to_ptr.vmem [resolvable:$true] %s126_s30 }
  0x19   : > { %s292_s4 = sshra.s32 %s129_s2, 4  ;;  %s298_s13 = scalar_lea.hbm %s442_s1, 16  ;;  %s293_s4 = int_to_ptr.hbm [resolvable:$true] %s292_s4 }
  0x1a   : > { %s294_s5 = scalar_lea.hbm %s293_s4, 8  ;;  %p299_p2 = scmp.lt.s32.totalorder %s293_s4, %s442_s1 }
  0x1b   : > { %p295_p13 = scmp.ne.s32.totalorder %s293_s4, %s294_s5  ;;  %p300_p3 = scmp.lt.s32.totalorder %s298_s13, %s294_s5 }
  0x1d   : > { %p296_p0 = pnand %p295_p13, %p395_p5  ;;  %p301_p4 = por %p300_p3, %p299_p2 }
  0x1f   : > { %p297_p1 = pneg %p296_p0 }
  0x21   : > { %p302_p7 = pnand %p301_p4, %p297_p1 }
  0x23   : > { %305 = shalt.err (!%p302_p7)
}
  0x24   : > { %202 = dma.vmem_to_hbm [thread:$0]  (%p395_p5), %s127_s30, 128, %s129_s2, %s114_s3  }
  0x25 PF: > { %p214_p8 = scmp.ge.s32.totalorder %s344_s9, 2  ;;  %s140_s19 = sand.u32 1, %s332_s6  }
  0x26   : > { %s141_s20 = scalar_lea.sflag [#allocation4], %s140_s19 }
  0x27   : > { %p209_p9 = pnand %p214_p8, %p399_p6 }
  0x29   : > { %p210_p10 = pneg %p209_p9 }
  0x2b   : > { %327 = dma.done.wait (%p210_p10), %s141_s20, 128  }
  0x2c   : > { %329 = vsyncadd (%p210_p10), %s141_s20, 4294967168  ;;  %p12_p11 = scmp.ge.s32.totalorder %s382_s12, 4   ;;  %s445_s6 = smov %s336_s7 }
  0x2d   : > { %s446_s7 = smov %s340_s8  ;;  %s447_s8 = smov %s393_s15 }
  0x2e   : > { %s448_s9 = smov %s382_s12  ;;  %14 = sbr.rel (!%p12_p11) target bundleno = 4 (0x4), region = 61 }
  0x33   :  { %147 = vsyncpa [#allocation3], 1 }
  0x34   :  { %149 = vsyncpa [#allocation3 + $0x1], 1 }
  0x35   :  { %150 = vsyncpa [#allocation4], 1 }
  0x36   :  { %152 = vsyncpa [#allocation4 + $0x1], 1 }

// kernel: forward.3
= control target key start
LH: loop header
LB: loop body
LE: loop exit
PB: predicated region body
PF: predicated region fallthrough
CT: control target
= control target key end

     0   :  { %vm110_vm0 = vcmask 523264   ;;  %vm158_vm1 = vcmask 261120   ;;  %s351_s1 = inlined_call_operand.vmem [shape: bf16[64,288], index: 1, kind: input, shape index: {}]   ;;  %s352_s0 = inlined_call_operand.vmem [shape: bf16[16,64], index: 0, kind: input, shape index: {}]   ;;  %s353_s2 = inlined_call_operand.vmem [shape: f32[1,288], index: 2, kind: input, shape index: {}]   ;;  %s354_s3 = inlined_call_operand.vmem [shape: f32[16,288], index: 3, kind: output, shape index: {}]  }
   0x1   :  { %v209_v0 = vld [vmem:[%s351_s1 + $0x48] sm:$0xf]  ;;  %v233_v1 = vld [vmem:[%s351_s1 + $0x50] sm:$0xf0]  ;;  %v232_v2 = vld [vmem:[%s351_s1 + $0x4c] sm:$0xf] }
   0x2   :  { %v210_v3 = vor.u32 %v233_v1, %v209_v0  ;;  %v211_v4 = vld [vmem:[%s351_s1 + $0x54] sm:$0xf0]  ;;  %v217_v5 = vld [vmem:[%s351_s1 + $0x50] sm:$0xf]  ;;  %v234_v6 = vld [vmem:[%s351_s1 + $0x58] sm:$0xf0] }
   0x3   :  { %v214_v7 = vor.u32 %v232_v2, %v211_v4  ;;  %v218_v8 = vor.u32 %v234_v6, %v217_v5  ;;  %v197_v9 = vld [vmem:[%s351_s1 + $0x30] sm:$0xf]  ;;  %v230_v10 = vld [vmem:[%s351_s1 + $0x38] sm:$0xf0]  ;;  %v229_v11 = vld [vmem:[%s351_s1 + $0x34] sm:$0xf] }
   0x4   :  { %118 = vmatpush.bf16.msra.mxu0 %v210_v3  ;;  %v198_v12 = vor.u32 %v230_v10, %v197_v9  ;;  %v199_v13 = vld [vmem:[%s351_s1 + $0x3c] sm:$0xf0]  ;;  %v205_v14 = vld [vmem:[%s351_s1 + $0x38] sm:$0xf]  ;;  %v231_v15 = vld [vmem:[%s351_s1 + $0x40] sm:$0xf0] }
   0x5   :  { %132 = vmatpush.bf16.msra.mxu1 %v214_v7  ;;  %146 = vmatpush.bf16.msra.mxu2 %v218_v8  ;;  %v202_v16 = vor.u32 %v229_v11, %v199_v13  ;;  %v206_v17 = vor.u32 %v231_v15, %v205_v14  ;;  %v185_v18 = vld [vmem:[%s351_s1 + $0x18] sm:$0xf]  ;;  %v227_v19 = vld [vmem:[%s351_s1 + $0x20] sm:$0xf0]  ;;  %v226_v20 = vld [vmem:[%s351_s1 + $0x1c] sm:$0xf] }
   0x6   :  { %v187_v21 = vld [vmem:[%s351_s1 + $0x24] sm:$0xf0]  ;;  %v193_v22 = vld [vmem:[%s351_s1 + $0x20] sm:$0xf]  ;;  %v228_v23 = vld [vmem:[%s351_s1 + $0x28] sm:$0xf0]  ;;  %v186_v24 = vor.u32 %v227_v19, %v185_v18 }
   0x7   :  { %v190_v25 = vor.u32 %v226_v20, %v187_v21  ;;  %v194_v26 = vor.u32 %v228_v23, %v193_v22  ;;  %v173_v27 = vld [vmem:[%s351_s1] sm:$0xf]  ;;  %v224_v28 = vld [vmem:[%s351_s1 + $0x8] sm:$0xf0]  ;;  %v223_v29 = vld [vmem:[%s351_s1 + $0x4] sm:$0xf] }
   0x8   :  { %119 = vmatpush.bf16.msra.mxu0 %v198_v12  ;;  %v175_v30 = vld [vmem:[%s351_s1 + $0xc] sm:$0xf0]  ;;  %v181_v31 = vld [vmem:[%s351_s1 + $0x8] sm:$0xf]  ;;  %v225_v32 = vld [vmem:[%s351_s1 + $0x10] sm:$0xf0]  ;;  %v174_v33 = vor.u32 %v224_v28, %v173_v27 }
   0x9   :  { %133 = vmatpush.bf16.msra.mxu1 %v202_v16  ;;  %147 = vmatpush.bf16.msra.mxu2 %v206_v17  ;;  %v178_v34 = vor.u32 %v223_v29, %v175_v30  ;;  %v182_v35 = vor.u32 %v225_v32, %v181_v31  ;;  %v222_v36 = vld [vmem:[%s352_s0] sm:$0xff] }
   0xa   :  { %v33_v37 = vld [vmem:[%s353_s2] sm:$0x7] }
   0xb   :  { %v35_v38 = vperm.slane %v33_v37, 0  ;;  %v36_v39 = vperm.slane %v33_v37, 1  ;;  %v37_v44 = vperm.slane %v33_v37, 2 }
   0xc   :  { %120 = vmatpush.bf16.msra.mxu0 %v186_v24 }
   0xd   :  { %134 = vmatpush.bf16.msra.mxu1 %v190_v25  ;;  %148 = vmatpush.bf16.msra.mxu2 %v194_v26 }
  0x10   :  { %121 = vmatpush.bf16.msra.mxu0 %v174_v33 }
  0x11   :  { %135 = vmatpush.bf16.msra.mxu1 %v178_v34  ;;  %149 = vmatpush.bf16.msra.mxu2 %v182_v35 }
  0x13   :  { %219 = vmatmul.msk.bf16.vlgmr.msra.gmra.mxu0 %vm110_vm0, %v222_v36 }
  0x14   :  { %220 = vmatmul.msk.bf16.vlgmr.msra.gmra.mxu1 %vm110_vm0, %v222_v36  ;;  %221 = vmatmul.msk.bf16.vlgmr.msra.gmra.mxu2 %vm110_vm0, %v222_v36 }
  0x90   :  { %v123_v40 = vpop.f32.mrf.mxu0 }
  0x91   :  { %v124_v41 = vadd.f32 %v123_v40, %v35_v38  ;;  %v137_v42 = vpop.f32.mrf.mxu1 }
  0x92   :  { %v138_v43 = vadd.f32 %v137_v42, %v36_v39 }
  0x93   :  { %156 = vst [vmem:[%s354_s3] sm:$0xff] %v124_v41 }
  0x94   :  { %157 = vst [vmem:[%s354_s3 + $0x8] sm:$0xff] %v138_v43 }
  0x97   :  { %v151_v45 = vpop.f32.mrf.mxu2 }
  0x98   :  { %v152_v46 = vadd.f32 %v151_v45, %v37_v44  ;;  %v125_v47 = vpop.f32.mrf.mxu0 }
  0x99   :  { %v126_v48 = vadd.f32 %v125_v47, %v35_v38  ;;  %v139_v49 = vpop.f32.mrf.mxu1 }
  0x9a   :  { %159 = vst.msk [vmem:[%s354_s3 + $0x10] sm:$0xff] %vm158_vm1, %v152_v46  ;;  %v140_v50 = vadd.f32 %v139_v49, %v36_v39 }
  0x9b   :  { %160 = vst [vmem:[%s354_s3 + $0x18] sm:$0xff] %v126_v48 }
  0x9c   :  { %161 = vst [vmem:[%s354_s3 + $0x20] sm:$0xff] %v140_v50 }
  0x9f   :  { %v153_v51 = vpop.f32.mrf.mxu2 }
  0xa0   :  { %v154_v52 = vadd.f32 %v153_v51, %v37_v44 }
  0xa2   :  { %162 = vst.msk [vmem:[%s354_s3 + $0x28] sm:$0xff] %vm158_vm1, %v154_v52 }

// kernel: forward.4
= control target key start
LH: loop header
LB: loop body
LE: loop exit
PB: predicated region body
PF: predicated region fallthrough
CT: control target
= control target key end

     0   :  { %s1615_s21 = smov 0   ;;  %s1617_s22 = smov 0   ;;  %s1912_s0 = inlined_call_operand.vmem [shape: f32[4,16,22], index: 0, kind: input, shape index: {}]   ;;  %s1913_s1 = inlined_call_operand.vmem [shape: f32[4,22,16], index: 1, kind: input, shape index: {}]   ;;  %s1914_s2 = inlined_call_operand.vmem [shape: bf16[4,16,128], index: 2, kind: input, shape index: {}]   ;;  %s1915_s3 = inlined_call_operand.vmem [shape: bf16[16,16,32], index: 3, kind: input, shape index: {}]   ;;  %s1916_s4 = inlined_call_operand.vmem [shape: bf16[8,4,32], index: 4, kind: input, shape index: {}]   ;;  %s1917_s5 = inlined_call_operand.vmem [shape: f32[16,4,32], index: 5, kind: output, shape index: {0}]   ;;  %s1918_s6 = inlined_call_operand.vmem [shape: f32[4,16,128], index: 6, kind: output, shape index: {1}]  }
   0x1   :  { %s1619_s23 = smov 0  }
   0x2 LB: > { %s1386_s24 = sadd.s32 4294967295, %s1576_s23   ;;  %s1632_s25 = sadd.s32 1, %s1576_s23   ;;  %s1576_s23 = sphi %s1619_s23, %s1922_s23   ;;  %s1572_s22 = sphi %s1617_s22, %s1921_s22   ;;  %s1568_s21 = sphi %s1615_s21, %s1920_s21  }
   0x3   : > { %s21_s26 = ssub.s32 %s1576_s23, %s1632_s25  ;;  %s24_s27 = sadd.s32 1, %s1572_s22 }
   0x4   : > { %p22_p0 = scmp.eq.s32.totalorder %s21_s26, 0  ;;  %p31_p1 = scmp.ne.s32.totalorder %s1572_s22, %s1568_s21 }
   0x5   : > { %p32_p2 = scmp.eq.s32.totalorder %s1576_s23, 0  ;;  %p176_p3 = scmp.eq.s32.totalorder %s1386_s24, 1 }
   0x6   : > { %s1643_s28 = scalar_select %p22_p0, %s1572_s22, %s24_s27  }
   0x7   : > { %p33_p4 = por %p32_p2, %p31_p1  ;;  %p1645_p5 = por %p176_p3, %p31_p1 }
   0x8   : > { %p1389_p6 = scmp.ge.s32.totalorder %s1576_s23, 2 }
   0xa   : > { %207 = sbr.rel (%p1389_p6) target bundleno = 23 (0x17), region = 28 }
   0xf   : > { %210 = sbr.rel (!%p33_p4) target bundleno = 23 (0x17), region = 32  ;;  %s212_s30 = sand.u32 (%p33_p4), 1, %s1572_s22  }
  0x10   : > { %s1391_s7 = sshll.u32 (%p33_p4), %s1576_s23, 3  ;;  %s1390_s8 = sshll.u32 (%p33_p4), %s212_s30, 5 }
  0x11   : > { %s216_s11 = scalar_lea.vmem (%p33_p4), %s1912_s0, %s1391_s7  ;;  %s214_s12 = scalar_lea.vmem (%p33_p4), [#allocation2], %s1390_s8 }
  0x12   : > { %v251_v0 = vld [vmem:[%s216_s11] sm:$0xff] (%p33_p4)  ;;  %v253_v1 = vld [vmem:[%s216_s11 + $0x10] sm:$0xff] (%p33_p4) }
  0x13   : > { %v255_v2 = vld [vmem:[%s216_s11 + $0x20] sm:$0xff] (%p33_p4)  ;;  %252 = vst [vmem:[%s214_s12] sm:$0xff] (%p33_p4), %v251_v0  ;;  %v257_v3 = vld [vmem:[%s216_s11 + $0x30] sm:$0xff] (%p33_p4) }
  0x14   : > { %254 = vst [vmem:[%s214_s12 + $0x8] sm:$0xff] %v253_v1 }
  0x15   : > { %256 = vst [vmem:[%s214_s12 + $0x10] sm:$0xff] %v255_v2 }
  0x16   : > { %258 = vst [vmem:[%s214_s12 + $0x18] sm:$0xff] %v257_v3 }
  0x17 PF: > { %p1392_p7 = scmp.ge.s32.totalorder %s1576_s23, 1  ;;  %p273_p8 = scmp.lt.s32.totalorder %s1576_s23, 3 }
  0x19   : > { %p274_p9 = pnand %p1392_p7, %p273_p8 }
  0x1a   : > { %s1659_s13 = sshll.u32 (!%p274_p9), %s1386_s24, 3  ;;  %s280_s30 = sand.u32 (!%p274_p9), 1, %s1568_s21  }
  0x1b   : > { %277 = sbr.rel (%p274_p9) target bundleno = 802 (0x322), region = 74  ;;  %p320_p10 = scmp.lt.s32.totalorder (!%p274_p9), %s1659_s13, 15 }
  0x1c   : > { %s1774_s7 = sshll.u32 (!%p274_p9), %s280_s30, 5 }
  0x1d   : > { %s282_s8 = scalar_lea.vmem (!%p274_p9), [#allocation2], %s1774_s7 }
  0x20   : > { %s1663_s14 = scalar_select %p320_p10, %s1659_s13, 15  ;;  %vm362_vm0 = vcmask 261120   ;;  %v349_v20 = vld [vmem:[%s1916_s4] sm:$0x3]  ;;  %v351_v21 = vld [vmem:[%s1916_s4 + $0x4] sm:$0x3] }
  0x21   : > { %v352_v22 = vld [vmem:[%s1916_s4 + $0x6] sm:$0x3]  ;;  %v350_v23 = vld [vmem:[%s1916_s4 + $0x2] sm:$0x3]  ;;  %vm570_vm1 = vcmask 1045504   ;;  %v561_v28 = vld [vmem:[%s1913_s1 + $0x38] sm:$0xff]  ;;  %s1247_s27 = scalar_lea.vmem (%p1645_p5), %s1918_s6, %s1659_s13 }
  0x22   : > { %s1480_s15 = sshll.u32 %s1663_s14, 3  ;;  %v562_v24 = vld [vmem:[%s1913_s1 + $0x40] sm:$0x3f]  ;;  %v565_v25 = vld [vmem:[%s1913_s1 + $0x58] sm:$0x3f]  ;;  %v564_v29 = vld [vmem:[%s1913_s1 + $0x50] sm:$0xff] }
  0x23   : > { %s324_s18 = scalar_lea.vmem %s1915_s3, %s1480_s15  ;;  %v556_v26 = vld [vmem:[%s1913_s1 + $0x10] sm:$0x3f]  ;;  %v559_v27 = vld [vmem:[%s1913_s1 + $0x28] sm:$0x3f]  ;;  %v558_v31 = vld [vmem:[%s1913_s1 + $0x20] sm:$0xff]  ;;  %vm566_vm2 = vcmask 179200  }
  0x24   : > { %v1669_v4 = vld [vmem:[%s324_s18] sm:$0xff]  ;;  %v1671_v5 = vld [vmem:[%s324_s18 + $0x10] sm:$0xff]  ;;  %v1673_v6 = vld [vmem:[%s324_s18 + $0x18] sm:$0xff]  ;;  %v1578_v61 = vmov 1983009808   ;;  %vm673_vm3 = vcmask 1047556  }
  0x25   : > { %v1675_v7 = vld [vmem:[%s324_s18 + $0x8] sm:$0xff]  ;;  %v1677_v8 = vld [vmem:[%s324_s18 + $0x30] sm:$0xff]  ;;  %v1679_v9 = vld [vmem:[%s324_s18 + $0x38] sm:$0xff]  ;;  %v367_v10 = vsel %vm362_vm0, %v1669_v4, 0  ;;  %v415_v11 = vsel %vm362_vm0, %v1671_v5, 0  ;;  %v439_v12 = vsel %vm362_vm0, %v1673_v6, 0  ;;  %v678_v62 = vunpack.c.l.s4 %v1578_v61 }
  0x26   : > { %v1687_v13 = vld [vmem:[%s324_s18 + $0x20] sm:$0xff]  ;;  %v1689_v14 = vld [vmem:[%s324_s18 + $0x28] sm:$0xff]  ;;  %376 = vmatpush.bf16.xpose.msra.mxu0 %v367_v10  ;;  %424 = vmatpush.bf16.xpose.msra.mxu2 %v415_v11  ;;  %v391_v15 = vsel %vm362_vm0, %v1675_v7, 0  ;;  %v511_v16 = vsel %vm362_vm0, %v1677_v8, 0  ;;  %v535_v17 = vsel %vm362_vm0, %v1679_v9, 0  ;;  %v560_v32 = vld [vmem:[%s1913_s1 + $0x30] sm:$0xff] }
  0x27   : > { %448 = vmatpush.bf16.xpose.msra.mxu3 %v439_v12  ;;  %400 = vmatpush.bf16.xpose.msra.mxu1 %v391_v15  ;;  %v463_v18 = vsel %vm362_vm0, %v1687_v13, 0  ;;  %v487_v19 = vsel %vm362_vm0, %v1689_v14, 0  ;;  %v555_v30 = vld [vmem:[%s1913_s1 + $0x8] sm:$0xff]  ;;  %v554_v34 = vld [vmem:[%s1913_s1] sm:$0xff]  ;;  %v557_v35 = vld [vmem:[%s1913_s1 + $0x18] sm:$0xff]  ;;  %v1789_v2 = vunpack.c.0.s8 %v678_v62  ;;  %vm737_vm4 = vcmask 125952  }
  0x28   : > { %v563_v33 = vld [vmem:[%s1913_s1 + $0x48] sm:$0xff]  ;;  %v552_v40 = vld [vmem:[%s282_s8 + $0x10] sm:$0xff]  ;;  %v550_v41 = vld [vmem:[%s282_s8] sm:$0xff]  ;;  %v1579_v3 = vmov 1934713408   ;;  %vm827_vm5 = vcmask 130048  }
  0x29   : > { %v353_v36 = vld [vmem:[%s1916_s4 + $0x8] sm:$0x3]  ;;  %v355_v37 = vld [vmem:[%s1916_s4 + $0xc] sm:$0x3]  ;;  %v356_v38 = vld [vmem:[%s1916_s4 + $0xe] sm:$0x3] }
  0x2a   : > { %v354_v39 = vld [vmem:[%s1916_s4 + $0xa] sm:$0x3]  ;;  %v553_v42 = vld [vmem:[%s282_s8 + $0x18] sm:$0xff]  ;;  %s1399_s18 = sshll.u32 %s1663_s14, 2  ;;  %vm971_vm6 = vcmask 257024   ;;  %vm1147_vm7 = vcmask 1041409  }
  0x2b   : > { %v551_v43 = vld [vmem:[%s282_s8 + $0x8] sm:$0xff]  ;;  %s1875_s23 = scalar_lea.vmem %s1917_s5, %s1399_s18  ;;  %vm1149_vm8 = vcmask 1042434   ;;  %vm1151_vm9 = vcmask 1043459   ;;  %vm1153_vm10 = vcmask 1044484   ;;  %vm1155_vm11 = vcmask 1045509   ;;  %s318_s14 = scalar_lea.vmem [#allocation3], %s1774_s7 }
  0x2c   : > { %vm1157_vm12 = vcmask 1046534   ;;  %vm1159_vm13 = vcmask 1047559  }
  0x2d   : > { %1404 = vmatmul.msk.bf16.vlgmr.msra.gmra.mxu0 %vm362_vm0, %v349_v20  ;;  %1414 = vmatmul.msk.bf16.vlgmr.msra.gmra.mxu2 %vm362_vm0, %v351_v21 }
  0x2e   : > { %520 = vmatpush.bf16.xpose.msrb.mxu2 %v511_v16  ;;  %472 = vmatpush.bf16.xpose.msrb.mxu0 %v463_v18 }
  0x2f   : > { %544 = vmatpush.bf16.xpose.msrb.mxu3 %v535_v17  ;;  %496 = vmatpush.bf16.xpose.msrb.mxu1 %v487_v19 }
  0x30   : > { %1419 = vmatmul.msk.bf16.vlgmr.msra.gmra.mxu3 %vm362_vm0, %v352_v22  ;;  %1409 = vmatmul.msk.bf16.vlgmr.msra.gmra.mxu1 %vm362_vm0, %v350_v23 }
  0x36   : > { %1444 = vmatpush.msk.msra.mxu2 %vm570_vm1, %v562_v24  ;;  %1440 = vmatpush.msk.msra.mxu0 %vm570_vm1, %v556_v26 }
  0x37   : > { %1446 = vmatpush.msk.msra.mxu3 %vm570_vm1, %v565_v25  ;;  %1442 = vmatpush.msk.msra.mxu1 %vm570_vm1, %v559_v27 }
  0x38   : > { %640 = vmatpush.msra.mxu2 %v561_v28  ;;  %588 = vmatpush.msra.mxu0 %v555_v30 }
  0x39   : > { %666 = vmatpush.msra.mxu3 %v564_v29  ;;  %614 = vmatpush.msra.mxu1 %v558_v31 }
  0x3a   : > { %641 = vmatpush.msra.mxu2 %v560_v32  ;;  %589 = vmatpush.msra.mxu0 %v554_v34 }
  0x3b   : > { %667 = vmatpush.msra.mxu3 %v563_v33  ;;  %615 = vmatpush.msra.mxu1 %v557_v35 }
  0x3d   : > { %1424 = vmatmul.msk.bf16.vlgmr.msrb.gmra.mxu0 %vm362_vm0, %v353_v36  ;;  %1434 = vmatmul.msk.bf16.vlgmr.msrb.gmra.mxu2 %vm362_vm0, %v355_v37 }
  0x3e   : > { %838 = vmatpush.bf16.msrb.mxu0 %v1669_v4  ;;  %872 = vmatpush.bf16.msrb.mxu2 %v1671_v5  ;;  %v702_v4 = vunpack.c.l.s4 %v1579_v3 }
  0x40   : > { %1439 = vmatmul.msk.bf16.vlgmr.msrb.gmra.mxu3 %vm362_vm0, %v356_v38  ;;  %1429 = vmatmul.msk.bf16.vlgmr.msrb.gmra.mxu1 %vm362_vm0, %v354_v39 }
  0x41   : > { %855 = vmatpush.bf16.msrb.mxu1 %v1675_v7  ;;  %889 = vmatpush.bf16.msrb.mxu3 %v1673_v6 }
  0x4d   : > { %1445 = vmatmul.msk.f32.vlgmr.msra.gmra.mxu2 %vm566_vm2, %v552_v40  ;;  %1441 = vmatmul.msk.f32.vlgmr.msra.gmra.mxu0 %vm566_vm2, %v550_v41 }
  0x4e   : > { %906 = vmatpush.bf16.msra.mxu0 %v1687_v13  ;;  %940 = vmatpush.bf16.msra.mxu2 %v1677_v8  ;;  %v1795_v13 = vunpack.c.0.s8 %v702_v4 }
  0x50   : > { %1447 = vmatmul.msk.f32.vlgmr.msra.gmra.mxu3 %vm566_vm2, %v553_v42  ;;  %1443 = vmatmul.msk.f32.vlgmr.msra.gmra.mxu1 %vm566_vm2, %v551_v43 }
  0x51   : > { %923 = vmatpush.bf16.msra.mxu1 %v1689_v14  ;;  %957 = vmatpush.bf16.msra.mxu3 %v1679_v9 }
  0xaa   : > { %v378_v44 = vpop.f32.mrf.mxu0 }
  0xad   : > { %v1781_v45 = vpop.f32.mrf.mxu1 }
  0xb0   : > { %v426_v46 = vpop.f32.mrf.mxu2 }
  0xb2   : > { %v380_v48 = vpop.f32.mrf.mxu0 }
  0xb3   : > { %v1783_v47 = vpop.f32.mrf.mxu3 }
  0xb5   : > { %v404_v49 = vpop.f32.mrf.mxu1 }
  0xb8   : > { %v428_v50 = vpop.f32.mrf.mxu2 }
  0xba   : > { %v1785_v52 = vpop.f32.mrf.mxu0 }
  0xbb   : > { %v452_v51 = vpop.f32.mrf.mxu3 }
  0xbd   : > { %v1787_v53 = vpop.f32.mrf.mxu1 }
  0xc0   : > { %v522_v54 = vpop.f32.mrf.mxu2 }
  0xc2   : > { %v476_v56 = vpop.f32.mrf.mxu0 }
  0xc3   : > { %v546_v55 = vpop.f32.mrf.mxu3 }
  0xc5   : > { %v500_v57 = vpop.f32.mrf.mxu1 }
  0xc8   : > { %v524_v58 = vpop.f32.mrf.mxu2 }
  0xca   : > { %v591_v60 = vpop.f32.mrf.mxu0 }
  0xcb   : > { %v548_v59 = vpop.f32.mrf.mxu3  ;;  %v675_v0 = vrot.slane %v591_v60, 4 }
  0xcd   : > { %v617_v63 = vpop.f32.mrf.mxu1 }
  0xce   : > { %v687_v1 = vrot.slane %v617_v63, 4 }
  0xd0   : > { %v643_v5 = vpop.f32.mrf.mxu2 }
  0xd1   : > { %v672_v6 = vrot.slane %v643_v5, 4  ;;  %v676_v7 = vsel %vm673_vm3, %v643_v5, %v675_v0 }
  0xd2   : > { %v684_v9 = vperm.slane %v676_v7, %v1789_v2 }
  0xd3   : > { %v669_v8 = vpop.f32.mrf.mxu3  ;;  %v674_v12 = vsel %vm673_vm3, %v672_v6, %v591_v60 }
  0xd4   : > { %v685_v10 = vrot.slane %v669_v8, 4  ;;  %v688_v11 = vsel %vm673_vm3, %v669_v8, %v687_v1  ;;  %v680_v14 = vperm.slane %v674_v12, %v1789_v2  ;;  %v711_v15 = vrot.slane %v684_v9, 4 }
  0xd5   : > { %v696_v17 = vperm.slane %v688_v11, %v1789_v2 }
  0xd6   : > { %v686_v16 = vsel %vm673_vm3, %v685_v10, %v617_v63  ;;  %v699_v20 = vrot.slane %v680_v14, 4 }
  0xd7   : > { %v692_v18 = vperm.slane %v686_v16, %v1789_v2  ;;  %v712_v19 = vsel %vm673_vm3, %v696_v17, %v711_v15  ;;  %v709_v23 = vrot.slane %v696_v17, 4  ;;  %v1489_v15 = vld [vmem:[%s1914_s2] sm:$0xff] }
  0xd8   : > { %v720_v21 = vperm.slane %v712_v19, %v1795_v13 }
  0xd9   : > { %v697_v22 = vrot.slane %v692_v18, 4  ;;  %v700_v24 = vsel %vm673_vm3, %v692_v18, %v699_v20  ;;  %v710_v36 = vsel %vm673_vm3, %v709_v23, %v684_v9  ;;  %v1491_v9 = vld [vmem:[%s1914_s2 + $0x10] sm:$0xff] }
  0xda   : > { %v735_v25 = vadd.f32 %v720_v21, %v522_v54  ;;  %v708_v26 = vperm.slane %v700_v24, %v1795_v13  ;;  %v727_v28 = vrot.slane %v720_v21, 4  ;;  %v716_v42 = vperm.slane %v710_v36, %v1795_v13 }
  0xdb   : > { %v698_v27 = vsel %vm673_vm3, %v697_v22, %v680_v14 }
  0xdc   : > { %v704_v29 = vperm.slane %v698_v27, %v1795_v13  ;;  %v756_v30 = vsel %vm737_vm4, %v735_v25, -inf  ;;  %v731_v31 = vadd.f32 %v708_v26, %v426_v46  ;;  %v723_v32 = vrot.slane %v708_v26, 4 }
  0xdd   : > { %757 = vmax.xlane.f32.xlu2 %v756_v30  ;;  %v728_v34 = vsel %vm673_vm3, 0.0, %v727_v28  ;;  %v725_v48 = vrot.slane %v716_v42, 4  ;;  %v733_v54 = vadd.f32 %v716_v42, %v1785_v52  ;;  %v1492_v28 = vld [vmem:[%s1914_s2 + $0x18] sm:$0xff] }
  0xde   : > { %v729_v33 = vadd.f32 %v704_v29, %v378_v44  ;;  %v721_v35 = vrot.slane %v704_v29, 4  ;;  %v744_v37 = vsel %vm737_vm4, %v731_v31, -inf  ;;  %v724_v39 = vsel %vm673_vm3, 0.0, %v723_v32 }
  0xdf   : > { %745 = vmax.xlane.f32.xlu0 %v744_v37  ;;  %v736_v40 = vadd.f32 %v728_v34, %v546_v55  ;;  %v732_v43 = vadd.f32 %v724_v39, %v1783_v47  ;;  %v726_v51 = vsel %vm673_vm3, 0.0, %v725_v48  ;;  %v750_v47 = vsel %vm737_vm4, %v733_v54, -inf }
  0xe0   : > { %v738_v38 = vsel %vm737_vm4, %v729_v33, -inf  ;;  %v722_v41 = vsel %vm673_vm3, 0.0, %v721_v35  ;;  %v734_v55 = vadd.f32 %v726_v51, %v1787_v53 }
  0xe1   : > { %739 = vmax.xlane.f32.xlu1 %v738_v38  ;;  %v730_v44 = vadd.f32 %v722_v41, %v1781_v45  ;;  %v759_v46 = vsel %vm737_vm4, %v736_v40, -inf  ;;  %v747_v49 = vsel %vm737_vm4, %v732_v43, -inf }
  0xe2   : > { %v753_v45 = vsel %vm737_vm4, %v734_v55, -inf }
  0xe3   : > { %v741_v50 = vsel %vm737_vm4, %v730_v44, -inf }
  0xe5   : > { %760 = vmax.xlane.f32.xlu2 %v759_v46 }
  0xe7   : > { %748 = vmax.xlane.f32.xlu0 %v747_v49 }
  0xe9   : > { %742 = vmax.xlane.f32.xlu1 %v741_v50 }
  0xef   : > { %751 = vmax.xlane.f32.xlu0 %v750_v47 }
  0xf1   : > { %754 = vmax.xlane.f32.xlu1 %v753_v45 }
 0x150   : > { %v758_v56 = vpop.xlane.xlu2 %757 }
 0x151   : > { %v768_v58 = vsub.f32 %v735_v25, %v758_v56 }
 0x152   : > { %v746_v57 = vpop.xlane.xlu0 %745 }
 0x153   : > { %v764_v59 = vsub.f32 %v731_v31, %v746_v57  ;;  %v782_v0 = vmul.f32 1.442695, %v768_v58 }
 0x154   : > { %v740_v60 = vpop.xlane.xlu1 %739 }
 0x155   : > { %v762_v61 = vsub.f32 %v729_v33, %v740_v60  ;;  %v774_v62 = vmul.f32 1.442695, %v764_v59  ;;  %v1490_v33 = vld [vmem:[%s1914_s2 + $0x8] sm:$0xff] }
 0x157   : > { %v770_v63 = vmul.f32 1.442695, %v762_v61  ;;  %1522 = vpow2.f32 %v774_v62 }
 0x158   : > { %v761_v52 = vpop.xlane.xlu2 %760 }
 0x159   : > { %1524 = vpow2.f32 %v770_v63  ;;  %v769_v1 = vsub.f32 %v736_v40, %v761_v52 }
 0x15a   : > { %v749_v53 = vpop.xlane.xlu0 %748  ;;  %1526 = vpow2.f32 %v782_v0 }
 0x15b   : > { %v784_v3 = vmul.f32 1.442695, %v769_v1  ;;  %v765_v4 = vsub.f32 %v732_v43, %v749_v53 }
 0x15c   : > { %v743_v5 = vpop.xlane.xlu1 %742 }
 0x15d   : > { %v763_v6 = vsub.f32 %v730_v44, %v743_v5  ;;  %v1523_v7 = vpop.eup %1522  ;;  %1528 = vpow2.f32 %v784_v3  ;;  %v776_v8 = vmul.f32 1.442695, %v765_v4 }
 0x15e   : > { %v820_v11 = vpack.c.bf16 %v1523_v7, %v1523_v7  ;;  %v792_v14 = vsel %vm737_vm4, %v1523_v7, 0.0 }
 0x15f   : > { %v1525_v10 = vpop.eup %1524  ;;  %v772_v12 = vmul.f32 1.442695, %v763_v6  ;;  %1530 = vpow2.f32 %v776_v8  ;;  %793 = vadd.xlane.f32.xlu1 %v792_v14 }
 0x160   : > { %v818_v16 = vpack.c.bf16 %v1525_v10, %v1525_v10  ;;  %v786_v17 = vsel %vm737_vm4, %v1525_v10, 0.0  ;;  %1450 = vmatmul.msk.bf16.vlgmr.msrb.gmra.mxu2 %vm827_vm5, %v820_v11  ;;  %v1527_v18 = vpop.eup %1526 }
 0x161   : > { %1532 = vpow2.f32 %v772_v12  ;;  %787 = vadd.xlane.f32.xlu2 %v786_v17  ;;  %1101 = vmatpush.bf16.msrb.mxu2 %v1491_v9  ;;  %v824_v23 = vpack.c.bf16 %v1527_v18, %v1527_v18  ;;  %v804_v46 = vsel %vm737_vm4, %v1527_v18, 0.0 }
 0x162   : > { %1448 = vmatmul.msk.bf16.vlgmr.msrb.gmra.mxu0 %vm827_vm5, %v818_v16  ;;  %v752_v19 = vpop.xlane.xlu0 %751 }
 0x163   : > { %1057 = vmatpush.bf16.msrb.mxu0 %v1489_v15  ;;  %v1529_v20 = vpop.eup %1528  ;;  %v766_v21 = vsub.f32 %v733_v54, %v752_v19  ;;  %v987_v35 = vrot.slane %v824_v23, 4 }
 0x164   : > { %v755_v22 = vpop.xlane.xlu1 %754  ;;  %v825_v26 = vpack.c.bf16 %v1529_v20, %v1529_v20  ;;  %v807_v1 = vsel %vm737_vm4, %v1529_v20, 0.0 }
 0x165   : > { %v767_v24 = vsub.f32 %v734_v55, %v755_v22  ;;  %v1531_v25 = vpop.eup %1530  ;;  %v778_v27 = vmul.f32 1.442695, %v766_v21  ;;  %v988_v37 = vsel %vm673_vm3, %v987_v35, %v820_v11  ;;  %v1137_v22 = vlaneseq }
 0x166   : > { %v821_v30 = vpack.c.bf16 %v1531_v25, %v1531_v25  ;;  %v795_v32 = vsel %vm737_vm4, %v1531_v25, 0.0  ;;  %v1007_v36 = vrot.slane %v825_v26, 4  ;;  %v992_v43 = vperm.slane %v988_v37, %v1789_v2 }
 0x167   : > { %v1533_v29 = vpop.eup %1532  ;;  %v780_v31 = vmul.f32 1.442695, %v767_v24  ;;  %1534 = vpow2.f32 %v778_v27 }
 0x168   : > { %v819_v34 = vpack.c.bf16 %v1533_v29, %v1533_v29  ;;  %1451 = vmatmul.msk.bf16.vlgmr.msrb.gmra.mxu3 %vm827_vm5, %v821_v30  ;;  %v1008_v39 = vsel %vm673_vm3, %v1007_v36, %v821_v30  ;;  %v993_v55 = vrot.slane %v992_v43, 4  ;;  %v789_v59 = vsel %vm737_vm4, %v1533_v29, 0.0 }
 0x169   : > { %1536 = vpow2.f32 %v780_v31  ;;  %796 = vadd.xlane.f32.xlu2 %v795_v32  ;;  %1123 = vmatpush.bf16.msrb.mxu3 %v1492_v28  ;;  %v1012_v49 = vperm.slane %v1008_v39, %v1789_v2  ;;  %v1138_v31 = vand.u32 127, %v1137_v22  ;;  %v1196_v43 = vshrl.u32 %v1137_v22, 7 }
 0x16a   : > { %1449 = vmatmul.msk.bf16.vlgmr.msrb.gmra.mxu1 %vm827_vm5, %v819_v34 }
 0x16b   : > { %1079 = vmatpush.bf16.msrb.mxu1 %v1490_v33  ;;  %v1013_v56 = vrot.slane %v1012_v49, 4  ;;  %1521 = vset.pattern.permute.xlu0 %v1196_v43 }
 0x16c   : > { %1520 = vset.pattern.permute.xlu2 %v1196_v43 }
 0x16d   : > { %v1535_v38 = vpop.eup %1534 }
 0x16e   : > { %v822_v41 = vpack.c.bf16 %v1535_v38, %v1535_v38  ;;  %v798_v42 = vsel %vm737_vm4, %v1535_v38, 0.0 }
 0x16f   : > { %v1537_v40 = vpop.eup %1536  ;;  %799 = vadd.xlane.f32.xlu0 %v798_v42 }
 0x170   : > { %v823_v44 = vpack.c.bf16 %v1537_v40, %v1537_v40  ;;  %v801_v48 = vsel %vm737_vm4, %v1537_v40, 0.0  ;;  %v980_v50 = vrot.slane %v822_v41, 4  ;;  %1454 = vmatmul.msk.bf16.vlgmr.msra.gmra.mxu2 %vm827_vm5, %v824_v23 }
 0x171   : > { %805 = vadd.xlane.f32.xlu2 %v804_v46  ;;  %802 = vadd.xlane.f32.xlu1 %v801_v48 }
 0x172   : > { %v1001_v51 = vrot.slane %v823_v44, 4  ;;  %1452 = vmatmul.msk.bf16.vlgmr.msra.gmra.mxu0 %vm827_vm5, %v822_v41  ;;  %v982_v54 = vsel %vm673_vm3, %v980_v50, %v818_v16 }
 0x173   : > { %v986_v47 = vperm.slane %v982_v54, %v1789_v2 }
 0x174   : > { %v1002_v45 = vsel %vm673_vm3, %v1001_v51, %v819_v34 }
 0x175   : > { %v1006_v57 = vperm.slane %v1002_v45, %v1789_v2  ;;  %v994_v58 = vsel %vm673_vm3, %v993_v55, %v986_v47 }
 0x176   : > { %v998_v60 = vperm.slane %v994_v58, %v1795_v13 }
 0x177   : > { %v1014_v61 = vsel %vm673_vm3, %v1013_v56, %v1006_v57  ;;  %790 = vadd.xlane.f32.xlu0 %v789_v59 }
 0x178   : > { %v1018_v62 = vperm.slane %v1014_v61, %v1795_v13  ;;  %1455 = vmatmul.msk.bf16.vlgmr.msra.gmra.mxu3 %vm827_vm5, %v825_v26  ;;  %v999_v63 = vrot.slane %v998_v60, 4  ;;  %v1024_v5 = vshrl.u32 %v998_v60, 16 }
 0x17a   : > { %1453 = vmatmul.msk.bf16.vlgmr.msra.gmra.mxu1 %vm827_vm5, %v823_v44  ;;  %v1019_v0 = vrot.slane %v1018_v62, 4  ;;  %v1000_v52 = vsel %vm673_vm3, 0, %v999_v63  ;;  %v1023_v53 = vpack.i.b16 %v1018_v62, %v998_v60  ;;  %v1025_v6 = vshrl.u32 %v1018_v62, 16 }
 0x17b   : > { %v1030_v13 = vshrl.u32 %v1000_v52, 16 }
 0x17c   : > { %v1020_v2 = vsel %vm673_vm3, 0, %v1019_v0  ;;  %v1026_v8 = vpack.i.b16 %v1025_v6, %v1024_v5 }
 0x17d   : > { %v1029_v3 = vpack.i.b16 %v1020_v2, %v1000_v52  ;;  %v1031_v4 = vshrl.u32 %v1020_v2, 16 }
 0x17f   : > { %808 = vadd.xlane.f32.xlu0 %v807_v1  ;;  %v1032_v7 = vpack.i.b16 %v1031_v4, %v1030_v13 }
 0x180   : > { %1470 = vmatmul.msk.bf16.vlgmr.msrb.gmra.mxu2 %vm827_vm5, %v1029_v3 }
 0x182   : > { %1460 = vmatmul.msk.bf16.vlgmr.msrb.gmra.mxu0 %vm827_vm5, %v1023_v53 }
 0x188   : > { %1475 = vmatmul.msk.bf16.vlgmr.msrb.gmra.mxu3 %vm827_vm5, %v1032_v7 }
 0x18a   : > { %1465 = vmatmul.msk.bf16.vlgmr.msrb.gmra.mxu1 %vm827_vm5, %v1026_v8 }
 0x1d2   : > { %v794_v10 = vpop.xlane.xlu1 %793 }
 0x1d4   : > { %v788_v9 = vpop.xlane.xlu2 %787 }
 0x1d5   : > { %1538 = vrcp.f32 %v788_v9 }
 0x1d6   : > { %1540 = vrcp.f32 %v794_v10 }
 0x1db   : > { %v1539_v11 = vpop.eup %1538 }
 0x1dc   : > { %v797_v15 = vpop.xlane.xlu2 %796  ;;  %v1541_v17 = vpop.eup %1540  ;;  %v1139_v36 = vperm.slane %v1539_v11, %v1138_v31 }
 0x1dd   : > { %1542 = vrcp.f32 %v797_v15  ;;  %v1141_v41 = vperm.slane %v1541_v17, %v1138_v31 }
 0x1df   : > { %v840_v12 = vpop.f32.mrf.mxu0 }
 0x1e0   : > { %v963_v14 = vmul.f32 %v1539_v11, %v840_v12 }
 0x1e2   : > { %972 = vst.msk [vmem:[%s1875_s23] sm:$0xf] %vm971_vm6, %v963_v14  ;;  %v800_v16 = vpop.xlane.xlu0 %799 }
 0x1e3   : > { %v874_v18 = vpop.f32.mrf.mxu2  ;;  %1544 = vrcp.f32 %v800_v16  ;;  %v1543_v25 = vpop.eup %1542 }
 0x1e4   : > { %v965_v19 = vmul.f32 %v1541_v17, %v874_v18  ;;  %v803_v23 = vpop.xlane.xlu1 %802  ;;  %v806_v26 = vpop.xlane.xlu2 %805  ;;  %v1142_v46 = vperm.slane %v1543_v25, %v1138_v31 }
 0x1e6   : > { %974 = vst.msk [vmem:[%s1875_s23 + $0x8] sm:$0xf] %vm971_vm6, %v965_v19 }
 0x1e7   : > { %v842_v20 = vpop.f32.mrf.mxu0  ;;  %v857_v21 = vpop.f32.mrf.mxu1 }
 0x1e9   : > { %v1545_v30 = vpop.eup %1544 }
 0x1ea   : > { %v791_v24 = vpop.xlane.xlu0 %790  ;;  %v1143_v50 = vperm.slane %v1545_v30, %v1138_v31 }
 0x1eb   : > { %1546 = vrcp.f32 %v791_v24  ;;  %v891_v27 = vpop.f32.mrf.mxu3  ;;  %v876_v28 = vpop.f32.mrf.mxu2 }
 0x1ec   : > { %v966_v29 = vmul.f32 %v1543_v25, %v891_v27  ;;  %1548 = vrcp.f32 %v803_v23 }
 0x1ed   : > { %1550 = vrcp.f32 %v806_v26 }
 0x1ee   : > { %975 = vst.msk [vmem:[%s1875_s23 + $0xc] sm:$0xf] %vm971_vm6, %v966_v29 }
 0x1ef   : > { %v859_v32 = vpop.f32.mrf.mxu1  ;;  %v908_v33 = vpop.f32.mrf.mxu0 }
 0x1f0   : > { %v967_v34 = vmul.f32 %v1545_v30, %v908_v33 }
 0x1f1   : > { %v1547_v35 = vpop.eup %1546 }
 0x1f2   : > { %976 = vst.msk [vmem:[%s1875_s23 + $0x10] sm:$0xf] %vm971_vm6, %v967_v34  ;;  %v964_v37 = vmul.f32 %v1547_v35, %v857_v21  ;;  %v1140_v38 = vperm.slane %v1547_v35, %v1138_v31  ;;  %v809_v39 = vpop.xlane.xlu0 %808  ;;  %v1549_v40 = vpop.eup %1548 }
 0x1f3   : > { %1552 = vrcp.f32 %v809_v39  ;;  %v893_v42 = vpop.f32.mrf.mxu3  ;;  %v1551_v44 = vpop.eup %1550  ;;  %v1144_v55 = vperm.slane %v1549_v40, %v1138_v31 }
 0x1f4   : > { %973 = vst.msk [vmem:[%s1875_s23 + $0x4] sm:$0xf] %vm971_vm6, %v964_v37  ;;  %v1148_v48 = vsel %vm1147_vm7, %v1140_v38, %v1139_v36  ;;  %v942_v49 = vpop.f32.mrf.mxu2  ;;  %v1145_v61 = vperm.slane %v1551_v44, %v1138_v31 }
 0x1f5   : > { %v969_v51 = vmul.f32 %v1551_v44, %v942_v49  ;;  %v1150_v54 = vsel %vm1149_vm8, %v1141_v41, %v1148_v48 }
 0x1f6   : > { %v1152_v56 = vsel %vm1151_vm9, %v1142_v46, %v1150_v54 }
 0x1f7   : > { %v910_v47 = vpop.f32.mrf.mxu0  ;;  %v925_v45 = vpop.f32.mrf.mxu1  ;;  %978 = vst.msk [vmem:[%s1875_s23 + $0x18] sm:$0xf] %vm971_vm6, %v969_v51  ;;  %v1154_v58 = vsel %vm1153_vm10, %v1143_v50, %v1152_v56 }
 0x1f8   : > { %v968_v57 = vmul.f32 %v1549_v40, %v925_v45  ;;  %v1156_v59 = vsel %vm1155_vm11, %v1144_v55, %v1154_v58 }
 0x1f9   : > { %v1553_v60 = vpop.eup %1552  ;;  %v1158_v0 = vsel %vm1157_vm12, %v1145_v61, %v1156_v59 }
 0x1fa   : > { %977 = vst.msk [vmem:[%s1875_s23 + $0x14] sm:$0xf] %vm971_vm6, %v968_v57  ;;  %v1146_v62 = vperm.slane %v1553_v60, %v1138_v31 }
 0x1fb   : > { %v959_v63 = vpop.f32.mrf.mxu3 }
 0x1fc   : > { %v944_v52 = vpop.f32.mrf.mxu2  ;;  %v970_v2 = vmul.f32 %v1553_v60, %v959_v63  ;;  %v1160_v1 = vsel %vm1159_vm13, %v1146_v62, %v1158_v0 }
 0x1fd   : > { %1162 = vxpose.xlu1.b32.start.end [1/1] (short) (narrow) %v1160_v1, 8 }
 0x1fe   : > { %979 = vst.msk [vmem:[%s1875_s23 + $0x1c] sm:$0xf] %vm971_vm6, %v970_v2 }
 0x1ff   : > { %v927_v53 = vpop.f32.mrf.mxu1  ;;  %v1059_v3 = vpop.f32.mrf.mxu0 }
 0x203   : > { %v961_v13 = vpop.f32.mrf.mxu3 }
 0x204   : > { %v1103_v4 = vpop.f32.mrf.mxu2 }
 0x207   : > { %v1061_v5 = vpop.f32.mrf.mxu0  ;;  %v1081_v6 = vpop.f32.mrf.mxu1 }
 0x20b   : > { %v1125_v7 = vpop.f32.mrf.mxu3 }
 0x20c   : > { %v1105_v8 = vpop.f32.mrf.mxu2 }
 0x20f   : > { %v1083_v9 = vpop.f32.mrf.mxu1 }
 0x213   : > { %v1127_v10 = vpop.f32.mrf.mxu3 }
 0x2a1   : > { %v1178_v11 = vpop.trf.xlu1 }
 0x2a2   : > { %v1194_v12 = vperm.slane %v1178_v11, 0  ;;  %v1201_v14 = vperm.slane %v1178_v11, 1  ;;  %v1208_v15 = vperm.slane %v1178_v11, 2  ;;  %v1215_v16 = vperm.slane %v1178_v11, 3 }
 0x2a4   : > { %1206 = vperm.xlu0 %1521, %v1201_v14   ;;  %1199 = vperm.xlu2 %1520, %v1194_v12  }
 0x2ac   : > { %1213 = vperm.xlu2 %1520, %v1208_v15  }
 0x2b4   : > { %1220 = vperm.xlu2 %1520, %v1215_v16  }
 0x2fe   : > { %v1200_v17 = vpop.permute.xlu2 %1199 }
 0x2ff   : > { %v1222_v18 = vmul.f32 %v1200_v17, %v1059_v3 }
 0x301   : > { %1226 = vst [vmem:[%s318_s14] sm:$0xff] %v1222_v18 }
 0x306   : > { %v1214_v19 = vpop.permute.xlu2 %1213 }
 0x307   : > { %v1224_v20 = vmul.f32 %v1214_v19, %v1103_v4 }
 0x308   : > { %v1282_v25 = vld [vmem:[%s318_s14] sm:$0xff] (%p1645_p5) }
 0x309   : > { %1228 = vst [vmem:[%s318_s14 + $0x10] sm:$0xff] %v1224_v20 }
 0x30a   : > { %1283 = vst [vmem:[%s1247_s27] sm:$0xff] (%p1645_p5), %v1282_v25 }
 0x30e   : > { %v1221_v21 = vpop.permute.xlu2 %1220 }
 0x30f   : > { %v1225_v22 = vmul.f32 %v1221_v21, %v1125_v7 }
 0x310   : > { %v1286_v27 = vld [vmem:[%s318_s14 + $0x10] sm:$0xff] (%p1645_p5) }
 0x311   : > { %1229 = vst [vmem:[%s318_s14 + $0x18] sm:$0xff] %v1225_v22 }
 0x312   : > { %1287 = vst [vmem:[%s1247_s27 + $0x20] sm:$0xff] (%p1645_p5), %v1286_v27 }
 0x315   : > { %1245 = sbr.rel (!%p1645_p5) target bundleno = 802 (0x322), region = 86 }
 0x316   : > { %v1207_v23 = vpop.permute.xlu0 %1206 }
 0x317   : > { %v1223_v24 = vmul.f32 %v1207_v23, %v1081_v6 }
 0x318   : > { %v1288_v28 = vld [vmem:[%s318_s14 + $0x18] sm:$0xff] (%p1645_p5) }
 0x319   : > { %1227 = vst [vmem:[%s318_s14 + $0x8] sm:$0xff] %v1223_v24 }
 0x31a   : > { %1289 = vst [vmem:[%s1247_s27 + $0x30] sm:$0xff] %v1288_v28 }
 0x320   : > { %v1284_v26 = vld [vmem:[%s318_s14 + $0x8] sm:$0xff] }
 0x321   : > { %1285 = vst [vmem:[%s1247_s27 + $0x10] sm:$0xff] %v1284_v26 }
 0x322 PF: > { %p14_p11 = scmp.ge.s32.totalorder %s1632_s25, 4   ;;  %s1920_s21 = smov %s1572_s22 }
 0x323   : > { %s1921_s22 = smov %s1643_s28  ;;  %s1922_s23 = smov %s1632_s25 }
 0x324   :  { %16 = sbr.rel (!%p14_p11) target bundleno = 2 (0x2), region = 166 }

// kernel: forward.5
= control target key start
LH: loop header
LB: loop body
LE: loop exit
PB: predicated region body
PF: predicated region fallthrough
CT: control target
= control target key end

     0   :  { %vm214_vm0 = vcmask 261120   ;;  %s984_s0 = inlined_call_operand.vmem [shape: f32[16,64], index: 0, kind: input, shape index: {}]   ;;  %s985_s1 = inlined_call_operand.vmem [shape: bf16[16,288], index: 1, kind: input, shape index: {}]   ;;  %s986_s2 = inlined_call_operand.vmem [shape: bf16[288,64], index: 2, kind: input, shape index: {}]   ;;  %s987_s3 = inlined_call_operand.vmem [shape: f32[1,64], index: 3, kind: input, shape index: {}]   ;;  %s988_s4 = inlined_call_operand.vmem [shape: f32[1,64], index: 4, kind: input, shape index: {}]   ;;  %s989_s5 = inlined_call_operand.vmem [shape: f32[1,64], index: 5, kind: input, shape index: {}]   ;;  %s990_s6 = inlined_call_operand.vmem [shape: f32[64,64], index: 6, kind: input, shape index: {}]   ;;  %s991_s7 = inlined_call_operand.vmem [shape: f32[1,64], index: 7, kind: input, shape index: {}]   ;;  %s992_s8 = inlined_call_operand.vmem [shape: f32[64,64], index: 8, kind: input, shape index: {}]   ;;  %s993_s9 = inlined_call_operand.vmem [shape: f32[1,64], index: 9, kind: input, shape index: {}]   ;;  %s994_s10 = inlined_call_operand.vmem [shape: f32[64,64], index: 10, kind: input, shape index: {}]   ;;  %s995_s11 = inlined_call_operand.vmem [shape: f32[1,64], index: 11, kind: input, shape index: {}]   ;;  %s996_s12 = inlined_call_operand.vmem [shape: f32[1,64], index: 12, kind: input, shape index: {}]   ;;  %s997_s13 = inlined_call_operand.vmem [shape: f32[1,64], index: 13, kind: input, shape index: {}]   ;;  %s998_s14 = inlined_call_operand.hbm [shape: f32[16,64], index: 14, kind: output, shape index: {}]  }
   0x1   :  { %v638_v0 = vld [vmem:[%s986_s2 + $0x38] sm:$0xff]  ;;  %v637_v2 = vld [vmem:[%s986_s2 + $0x30] sm:$0xff]  ;;  %v648_v4 = vld [vmem:[%s986_s2 + $0x88] sm:$0xff] }
   0x2   :  { %v646_v1 = vld [vmem:[%s986_s2 + $0x78] sm:$0xff]  ;;  %218 = vmatpush.bf16.msra.mxu0 %v638_v0  ;;  %v645_v3 = vld [vmem:[%s986_s2 + $0x70] sm:$0xff]  ;;  %252 = vmatpush.bf16.msra.mxu2 %v648_v4  ;;  %v647_v5 = vld [vmem:[%s986_s2 + $0x80] sm:$0xff] }
   0x3   :  { %232 = vmatpush.bf16.msra.mxu1 %v646_v1  ;;  %v547_v6 = vld [vmem:[%s985_s1 + $0x8] sm:$0xf]  ;;  %v630_v7 = vld [vmem:[%s985_s1 + $0x10] sm:$0xf0]  ;;  %v635_v11 = vld [vmem:[%s986_s2 + $0x20] sm:$0xff] }
   0x4   :  { %v636_v8 = vld [vmem:[%s986_s2 + $0x28] sm:$0xff]  ;;  %v548_v10 = vor.u32 %v630_v7, %v547_v6  ;;  %v643_v12 = vld [vmem:[%s986_s2 + $0x60] sm:$0xff] }
   0x5   :  { %v644_v9 = vld [vmem:[%s986_s2 + $0x68] sm:$0xff] }
   0x6   :  { %219 = vmatpush.bf16.msra.mxu0 %v637_v2  ;;  %253 = vmatpush.bf16.msra.mxu2 %v647_v5 }
   0x7   :  { %233 = vmatpush.bf16.msra.mxu1 %v645_v3 }
   0xa   :  { %220 = vmatpush.bf16.msra.mxu0 %v636_v8 }
   0xb   :  { %234 = vmatpush.bf16.msra.mxu1 %v644_v9 }
   0xc   :  { %19 = vsyncpa [#allocation3], 0  ;;  %621 = vmatmul.msk.bf16.vlgmr.msra.gmra.mxu2 %vm214_vm0, %v548_v10  ;;  %v634_v13 = vld [vmem:[%s986_s2 + $0x18] sm:$0xff]  ;;  %v633_v15 = vld [vmem:[%s986_s2 + $0x10] sm:$0xff]  ;;  %vm270_vm1 = vcmask 523264   ;;  %v697_v46 = vmov 64.0  }
   0xd   :  { %v642_v14 = vld [vmem:[%s986_s2 + $0x58] sm:$0xff]  ;;  %v641_v16 = vld [vmem:[%s986_s2 + $0x50] sm:$0xff]  ;;  %v632_v17 = vld [vmem:[%s986_s2 + $0x8] sm:$0xff]  ;;  %661 = vrcp.f32 %v697_v46  ;;  %s700_s29 = smov 8  }
   0xe   :  { %221 = vmatpush.bf16.msra.mxu0 %v635_v11  ;;  %v640_v18 = vld [vmem:[%s986_s2 + $0x48] sm:$0xff]  ;;  %v631_v19 = vld [vmem:[%s986_s2] sm:$0xff]  ;;  %v541_v24 = vld [vmem:[%s985_s1 + $0xc] sm:$0xf0] }
   0xf   :  { %235 = vmatpush.bf16.msra.mxu1 %v643_v12  ;;  %v639_v20 = vld [vmem:[%s986_s2 + $0x40] sm:$0xff]  ;;  %v629_v22 = vld [vmem:[%s985_s1 + $0x8] sm:$0xf0]  ;;  %v339_v63 = vld [vmem:[%s990_s6 + $0x38] sm:$0xff]  ;;  %s525_s2 = sshll.u32 %s998_s14, 4  ;;  %s526_s2 = int_to_ptr.hbm [resolvable:$true] %s525_s2 }
  0x10   :  { %v539_v21 = vld [vmem:[%s985_s1] sm:$0xf]  ;;  %v628_v23 = vld [vmem:[%s985_s1 + $0x4] sm:$0xf]  ;;  %v50_v41 = vld [vmem:[%s984_s0 + $0x8] sm:$0xff]  ;;  %358 = vmatpush.msra.mxu3 %v339_v63 }
  0x11   :  { %v540_v25 = vor.u32 %v629_v22, %v539_v21  ;;  %v544_v26 = vor.u32 %v628_v23, %v541_v24  ;;  %v49_v31 = vld [vmem:[%s984_s0] sm:$0xff]  ;;  %v338_v0 = vld [vmem:[%s990_s6 + $0x30] sm:$0xff]  ;;  %v337_v1 = vld [vmem:[%s990_s6 + $0x28] sm:$0xff] }
  0x12   :  { %222 = vmatpush.bf16.msra.mxu0 %v634_v13  ;;  %v653_v33 = vld [vmem:[%s987_s3] ss:$0 sm:$0xff]  ;;  %359 = vmatpush.msra.mxu3 %v338_v0  ;;  %v335_v3 = vld [vmem:[%s990_s6 + $0x18] sm:$0xff]  ;;  %v334_v4 = vld [vmem:[%s990_s6 + $0x10] sm:$0xff] }
  0x13   :  { %236 = vmatpush.bf16.msra.mxu1 %v642_v14  ;;  %v662_v47 = vpop.eup %661  ;;  %v336_v2 = vld [vmem:[%s990_s6 + $0x20] sm:$0xff]  ;;  %v333_v5 = vld [vmem:[%s990_s6 + $0x8] sm:$0xff]  ;;  %v382_v10 = vld [vmem:[%s992_s8 + $0x38] sm:$0xff] }
  0x14   :  { %v278_v48 = vmul.f32 64.0, %v662_v47  ;;  %vm282_vm2 = vweird.f32 %v662_v47  ;;  %360 = vmatpush.msra.mxu3 %v337_v1  ;;  %v332_v6 = vld [vmem:[%s990_s6] sm:$0xff]  ;;  %v381_v11 = vld [vmem:[%s992_s8 + $0x30] sm:$0xff]  ;;  %401 = vmatpush.msrb.mxu2 %v382_v10  ;;  %v380_v12 = vld [vmem:[%s992_s8 + $0x28] sm:$0xff] }
  0x15   :  { %v422_v46 = vld [vmem:[%s994_s10 + $0x20] sm:$0xff] }
  0x16   :  { %223 = vmatpush.bf16.msra.mxu0 %v633_v15  ;;  %v279_v49 = vsub.f32 1.0, %v278_v48  ;;  %361 = vmatpush.msra.mxu3 %v336_v2  ;;  %v379_v15 = vld [vmem:[%s992_s8 + $0x20] sm:$0xff]  ;;  %v420_v48 = vld [vmem:[%s994_s10 + $0x10] sm:$0xff] }
  0x17   :  { %237 = vmatpush.bf16.msra.mxu1 %v641_v16  ;;  %402 = vmatpush.msrb.mxu2 %v381_v11  ;;  %v658_v2 = vld [vmem:[%s995_s11] ss:$0 sm:$0xff] }
  0x18   :  { %v280_v50 = vmul.f32 %v662_v47, %v279_v49  ;;  %362 = vmatpush.msra.mxu3 %v335_v3  ;;  %v656_v49 = vld [vmem:[%s991_s7] ss:$0 sm:$0xff] }
  0x19   :  { %403 = vmatpush.msrb.mxu2 %v380_v12 }
  0x1a   :  { %224 = vmatpush.bf16.msra.mxu0 %v632_v17  ;;  %v281_v51 = vadd.f32 %v662_v47, %v280_v50  ;;  %363 = vmatpush.msra.mxu3 %v334_v4 }
  0x1b   :  { %238 = vmatpush.bf16.msra.mxu1 %v640_v18  ;;  %v378_v18 = vld [vmem:[%s992_s8 + $0x18] sm:$0xff]  ;;  %404 = vmatpush.msrb.mxu2 %v379_v15 }
  0x1c   :  { %v859_v52 = vsel %vm282_vm2, %v662_v47, %v281_v51  ;;  %364 = vmatpush.msra.mxu3 %v333_v5  ;;  %v421_v47 = vld [vmem:[%s994_s10 + $0x18] sm:$0xff] }
  0x1d   :  { %405 = vmatpush.msrb.mxu2 %v378_v18 }
  0x1e   :  { %225 = vmatpush.bf16.msra.mxu0 %v631_v19  ;;  %365 = vmatpush.msra.mxu3 %v332_v6 }
  0x1f   :  { %239 = vmatpush.bf16.msra.mxu1 %v639_v20  ;;  %v377_v20 = vld [vmem:[%s992_s8 + $0x10] sm:$0xff] }
  0x20   :  { %406 = vmatpush.msrb.mxu2 %v377_v20 }
  0x21   :  { %226 = vmatmul.bf16.vlgmr.msra.gmra.mxu0 %v540_v25 }
  0x22   :  { %240 = vmatmul.bf16.vlgmr.msra.gmra.mxu1 %v544_v26 }
  0x8f   :  { %v255_v27 = vpop.f32.mrf.mxu2 }
  0x97   :  { %v257_v40 = vpop.f32.mrf.mxu2 }
  0x9e   :  { %v227_v28 = vpop.f32.mrf.mxu0 }
  0x9f   :  { %v241_v29 = vpop.f32.mrf.mxu1 }
  0xa0   :  { %v242_v30 = vadd.f32 %v241_v29, %v227_v28 }
  0xa2   :  { %v256_v32 = vadd.f32 %v255_v27, %v242_v30  ;;  %v654_v27 = vld [vmem:[%s988_s4] ss:$0 sm:$0xff] }
  0xa4   :  { %v260_v34 = vadd.f32 %v256_v32, %v49_v31  ;;  %v655_v31 = vld [vmem:[%s989_s5] ss:$0 sm:$0xff] }
  0xa6   :  { %v266_v35 = vadd.f32 %v653_v33, %v260_v34  ;;  %v229_v36 = vpop.f32.mrf.mxu0 }
  0xa7   :  { %v243_v37 = vpop.f32.mrf.mxu1 }
  0xa8   :  { %v244_v38 = vadd.f32 %v243_v37, %v229_v36  ;;  %v271_v39 = vsel %vm270_vm1, %v266_v35, 0.0 }
  0xa9   :  { %272 = vadd.xlane.f32.xlu0 %v271_v39 }
  0xaa   :  { %v258_v42 = vadd.f32 %v257_v40, %v244_v38 }
  0xac   :  { %v261_v43 = vadd.f32 %v258_v42, %v50_v41  ;;  %v376_v41 = vld [vmem:[%s992_s8 + $0x8] sm:$0xff]  ;;  %v375_v42 = vld [vmem:[%s992_s8] sm:$0xff] }
  0xad   :  { %407 = vmatpush.msrb.mxu2 %v376_v41 }
  0xae   :  { %v267_v44 = vadd.f32 %v653_v33, %v261_v43  ;;  %v425_v43 = vld [vmem:[%s994_s10 + $0x38] sm:$0xff] }
  0xaf   :  { %408 = vmatpush.msrb.mxu2 %v375_v42  ;;  %444 = vmatpush.msrb.mxu3 %v425_v43 }
  0xb0   :  { %v274_v45 = vsel %vm270_vm1, %v267_v44, 0.0 }
  0xb1   :  { %275 = vadd.xlane.f32.xlu0 %v274_v45  ;;  %v423_v45 = vld [vmem:[%s994_s10 + $0x28] sm:$0xff] }
 0x11c   :  { %v273_v53 = vpop.xlane.xlu0 %272 }
 0x11d   :  { %v284_v54 = vmul.f32 %v859_v52, %v273_v53 }
 0x11f   :  { %v286_v55 = vsub.f32 %v266_v35, %v284_v54 }
 0x121   :  { %v288_v56 = vmul.f32 %v286_v55, %v286_v55 }
 0x123   :  { %v290_v57 = vsel %vm270_vm1, %v288_v56, 0.0 }
 0x124   :  { %291 = vadd.xlane.f32.xlu1 %v290_v57  ;;  %v276_v58 = vpop.xlane.xlu0 %275  ;;  %v419_v57 = vld [vmem:[%s994_s10 + $0x8] sm:$0xff] }
 0x125   :  { %v285_v59 = vmul.f32 %v859_v52, %v276_v58  ;;  %v418_v58 = vld [vmem:[%s994_s10] sm:$0xff] }
 0x127   :  { %v864_v60 = vsub.f32 %v267_v44, %v285_v59  ;;  %v424_v44 = vld [vmem:[%s994_s10 + $0x30] sm:$0xff]  ;;  %v657_v59 = vld [vmem:[%s993_s9] ss:$0 sm:$0xff] }
 0x128   :  { %445 = vmatpush.msrb.mxu3 %v424_v44 }
 0x129   :  { %v289_v61 = vmul.f32 %v864_v60, %v864_v60 }
 0x12a   :  { %446 = vmatpush.msrb.mxu3 %v423_v45 }
 0x12b   :  { %v293_v62 = vsel %vm270_vm1, %v289_v61, 0.0 }
 0x12c   :  { %294 = vadd.xlane.f32.xlu1 %v293_v62  ;;  %447 = vmatpush.msrb.mxu3 %v422_v46 }
 0x12e   :  { %448 = vmatpush.msrb.mxu3 %v421_v47 }
 0x130   :  { %449 = vmatpush.msrb.mxu3 %v420_v48 }
 0x132   :  { %450 = vmatpush.msrb.mxu3 %v419_v57 }
 0x134   :  { %451 = vmatpush.msrb.mxu3 %v418_v58 }
 0x197   :  { %v292_v7 = vpop.xlane.xlu1 %291 }
 0x198   :  { %v296_v8 = vmul.f32 %v292_v7, %v859_v52 }
 0x19a   :  { %v298_v9 = vadd.f32 1e-05, %v296_v8 }
 0x19c   :  { %663 = vrsqrt.f32 %v298_v9  ;;  %vm306_vm4 = vweird.f32 %v298_v9 }
 0x19f   :  { %v295_v13 = vpop.xlane.xlu1 %294 }
 0x1a0   :  { %v297_v14 = vmul.f32 %v295_v13, %v859_v52 }
 0x1a2   :  { %v664_v16 = vpop.eup %663  ;;  %v299_v17 = vadd.f32 1e-05, %v297_v14 }
 0x1a3   :  { %v301_v19 = vmul.f32 %v664_v16, %v298_v9  ;;  %vm307_vm3 = vweird.f32 %v664_v16 }
 0x1a4   :  { %665 = vrsqrt.f32 %v299_v17  ;;  %vm308_vm5 = vmor %vm306_vm4, %vm307_vm3  ;;  %vm316_vm7 = vweird.f32 %v299_v17 }
 0x1a5   :  { %v302_v21 = vmul.f32 %v664_v16, %v301_v19 }
 0x1a7   :  { %v303_v22 = vmul.f32 0.5, %v302_v21 }
 0x1a9   :  { %v304_v23 = vsub.f32 1.5, %v303_v22 }
 0x1aa   :  { %v666_v24 = vpop.eup %665 }
 0x1ab   :  { %v305_v25 = vmul.f32 %v664_v16, %v304_v23  ;;  %v311_v26 = vmul.f32 %v666_v24, %v299_v17  ;;  %vm317_vm6 = vweird.f32 %v666_v24 }
 0x1ac   :  { %vm318_vm8 = vmor %vm316_vm7, %vm317_vm6 }
 0x1ad   :  { %v309_v28 = vsel %vm308_vm5, %v664_v16, %v305_v25  ;;  %v312_v29 = vmul.f32 %v666_v24, %v311_v26 }
 0x1ae   :  { %v320_v30 = vmul.f32 %v309_v28, %v286_v55 }
 0x1af   :  { %v313_v32 = vmul.f32 0.5, %v312_v29 }
 0x1b0   :  { %v325_v33 = vmul.f32 %v654_v27, %v320_v30 }
 0x1b1   :  { %v314_v34 = vsub.f32 1.5, %v313_v32 }
 0x1b2   :  { %v330_v35 = vadd.f32 %v655_v31, %v325_v33 }
 0x1b3   :  { %v315_v36 = vmul.f32 %v666_v24, %v314_v34 }
 0x1b4   :  { %622 = vmatmul.msk.f32.vlgmr.msra.gmra.mxu3 %vm270_vm1, %v330_v35 }
 0x1b5   :  { %v319_v37 = vsel %vm318_vm8, %v666_v24, %v315_v36 }
 0x1b6   :  { %v321_v38 = vmul.f32 %v319_v37, %v864_v60 }
 0x1b8   :  { %v326_v39 = vmul.f32 %v654_v27, %v321_v38  ;;  %v660_v38 = vld [vmem:[%s997_s13] ss:$0 sm:$0xff]  ;;  %s699_s13 = smov 128  }
 0x1ba   :  { %v331_v40 = vadd.f32 %v655_v31, %v326_v39 }
 0x1bc   :  { %623 = vmatmul.msk.f32.gmra.mxu3 %vm270_vm1, %v331_v40 }
 0x237   :  { %v367_v50 = vpop.f32.mrf.mxu3 }
 0x238   :  { %v368_v51 = vadd.f32 %v656_v49, %v367_v50 }
 0x23a   :  { %v373_v53 = vmax.f32 %v368_v51, 0.0 }
 0x23c   :  { %624 = vmatmul.msk.f32.vlgmr.msrb.gmra.mxu2 %vm270_vm1, %v373_v53 }
 0x23f   :  { %v370_v54 = vpop.f32.mrf.mxu3 }
 0x240   :  { %v371_v55 = vadd.f32 %v656_v49, %v370_v54 }
 0x242   :  { %v374_v56 = vmax.f32 %v371_v55, 0.0 }
 0x244   :  { %625 = vmatmul.msk.f32.gmra.mxu2 %vm270_vm1, %v374_v56 }
 0x2bf   :  { %v410_v60 = vpop.f32.mrf.mxu2 }
 0x2c0   :  { %v411_v61 = vadd.f32 %v657_v59, %v410_v60 }
 0x2c2   :  { %v416_v62 = vmax.f32 %v411_v61, 0.0 }
 0x2c4   :  { %626 = vmatmul.msk.f32.vlgmr.msrb.gmra.mxu3 %vm270_vm1, %v416_v62 }
 0x2c7   :  { %v413_v63 = vpop.f32.mrf.mxu2 }
 0x2c8   :  { %v414_v0 = vadd.f32 %v657_v59, %v413_v63 }
 0x2ca   :  { %v417_v1 = vmax.f32 %v414_v0, 0.0 }
 0x2cc   :  { %627 = vmatmul.msk.f32.gmra.mxu3 %vm270_vm1, %v417_v1 }
 0x347   :  { %v453_v3 = vpop.f32.mrf.mxu3 }
 0x348   :  { %v454_v4 = vadd.f32 %v658_v2, %v453_v3 }
 0x34a   :  { %v459_v5 = vadd.f32 %v454_v4, %v330_v35  ;;  %v659_v35 = vld [vmem:[%s996_s12] ss:$0 sm:$0xff]  ;;  %s698_s12 = smov [#allocation2]  }
 0x34b   :  { %s523_s5 = sshll.u32 %s698_s12, 4  ;;  %s524_s5 = int_to_ptr.vmem [resolvable:$true] %s523_s5 }
 0x34c   :  { %v463_v6 = vsel %vm270_vm1, %v459_v5, 0.0 }
 0x34d   :  { %464 = vadd.xlane.f32.xlu2 %v463_v6 }
 0x34f   :  { %v456_v7 = vpop.f32.mrf.mxu3 }
 0x350   :  { %v457_v8 = vadd.f32 %v658_v2, %v456_v7 }
 0x352   :  { %v460_v9 = vadd.f32 %v457_v8, %v331_v40 }
 0x354   :  { %v466_v10 = vsel %vm270_vm1, %v460_v9, 0.0 }
 0x355   :  { %467 = vadd.xlane.f32.xlu2 %v466_v10 }
 0x3c0   :  { %v465_v11 = vpop.xlane.xlu2 %464 }
 0x3c1   :  { %v469_v12 = vmul.f32 %v465_v11, %v859_v52 }
 0x3c3   :  { %v471_v13 = vsub.f32 %v459_v5, %v469_v12 }
 0x3c5   :  { %v473_v14 = vmul.f32 %v471_v13, %v471_v13 }
 0x3c7   :  { %v475_v15 = vsel %vm270_vm1, %v473_v14, 0.0 }
 0x3c8   :  { %476 = vadd.xlane.f32.xlu0 %v475_v15  ;;  %v468_v16 = vpop.xlane.xlu2 %467 }
 0x3c9   :  { %v470_v17 = vmul.f32 %v468_v16, %v859_v52 }
 0x3cb   :  { %v472_v18 = vsub.f32 %v460_v9, %v470_v17 }
 0x3cd   :  { %v474_v19 = vmul.f32 %v472_v18, %v472_v18 }
 0x3cf   :  { %v478_v20 = vsel %vm270_vm1, %v474_v19, 0.0 }
 0x3d0   :  { %479 = vadd.xlane.f32.xlu1 %v478_v20 }
 0x43b   :  { %v477_v21 = vpop.xlane.xlu0 %476 }
 0x43c   :  { %v481_v22 = vmul.f32 %v477_v21, %v859_v52 }
 0x43e   :  { %v483_v23 = vadd.f32 1e-05, %v481_v22 }
 0x440   :  { %667 = vrsqrt.f32 %v483_v23  ;;  %vm491_vm10 = vweird.f32 %v483_v23 }
 0x443   :  { %v480_v24 = vpop.xlane.xlu1 %479 }
 0x444   :  { %v482_v25 = vmul.f32 %v480_v24, %v859_v52 }
 0x446   :  { %v668_v26 = vpop.eup %667  ;;  %v484_v27 = vadd.f32 1e-05, %v482_v25 }
 0x447   :  { %v486_v28 = vmul.f32 %v668_v26, %v483_v23  ;;  %vm492_vm9 = vweird.f32 %v668_v26 }
 0x448   :  { %669 = vrsqrt.f32 %v484_v27  ;;  %vm493_vm11 = vmor %vm491_vm10, %vm492_vm9  ;;  %vm501_vm13 = vweird.f32 %v484_v27 }
 0x449   :  { %v487_v29 = vmul.f32 %v668_v26, %v486_v28 }
 0x44b   :  { %v488_v30 = vmul.f32 0.5, %v487_v29 }
 0x44d   :  { %v489_v31 = vsub.f32 1.5, %v488_v30 }
 0x44e   :  { %v670_v32 = vpop.eup %669 }
 0x44f   :  { %v490_v33 = vmul.f32 %v668_v26, %v489_v31  ;;  %v496_v34 = vmul.f32 %v670_v32, %v484_v27  ;;  %vm502_vm12 = vweird.f32 %v670_v32 }
 0x450   :  { %vm503_vm14 = vmor %vm501_vm13, %vm502_vm12 }
 0x451   :  { %v494_v36 = vsel %vm493_vm11, %v668_v26, %v490_v33  ;;  %v497_v37 = vmul.f32 %v670_v32, %v496_v34 }
 0x452   :  { %v505_v52 = vmul.f32 %v494_v36, %v471_v13 }
 0x453   :  { %v498_v39 = vmul.f32 0.5, %v497_v37 }
 0x454   :  { %v510_v40 = vmul.f32 %v659_v35, %v505_v52 }
 0x455   :  { %v499_v41 = vsub.f32 1.5, %v498_v39 }
 0x456   :  { %v515_v42 = vadd.f32 %v660_v38, %v510_v40 }
 0x457   :  { %v500_v43 = vmul.f32 %v670_v32, %v499_v41 }
 0x458   :  { %517 = vst.msk [vmem:[#allocation2] sm:$0xff] %vm270_vm1, %v515_v42 }
 0x459   :  { %v504_v44 = vsel %vm503_vm14, %v670_v32, %v500_v43 }
 0x45a   :  { %v506_v45 = vmul.f32 %v504_v44, %v472_v18 }
 0x45c   :  { %v511_v46 = vmul.f32 %v659_v35, %v506_v45 }
 0x45e   :  { %v516_v47 = vadd.f32 %v660_v38, %v511_v46 }
 0x460   :  { %518 = vst.msk [vmem:[#allocation2 + $0x8] sm:$0xff] %vm270_vm1, %v516_v47 }
 0x461   :  { %531 = dma.vmem_to_hbm [thread:$0]  %s524_s5, 256, %s526_s2, [#allocation3], %s699_s13, %s699_s13, %s700_s29  }
 0x462   :  { %695 = dma.done.wait [#allocation3], 256  }
 0x463   :  { %696 = vsyncadd [#allocation3], 4294967040 }
 0x464   :  { %536 = vsyncpa [#allocation3], 1 }

</bundles_post_ra>
